<compile_context>
chip_gen: v7x
topology: tpu7x:2x2x1
jax: 0.10.0
libtpu: 0.0.40
codegen_flags: <defaults>
</compile_context>

<pallas_src>
import functools

import jax
import jax.numpy as jnp
import numpy as np
from jax.experimental import pallas as pl
from jax.experimental.pallas import tpu as pltpu

_EPS = 1e-5
_LEAKY_SLOPE = 0.01            # InPlaceABNSync default activation_param


def _round_up(x, m):
    return (x + m - 1) // m * m


def _vmem_budgets():
    """(tile-picker budget, scoped vmem_limit_bytes), per TPU generation."""
    try:
        phys = pltpu.get_tpu_info().vmem_capacity_bytes
    except Exception:              # unknown chip / interpret: assume 64 MiB (v7x-like)
        phys = 64 * 1024 * 1024
    if phys >= 128 * 1024 * 1024:  # v5e / v6e: 128 MiB physical VMEM
        return 56 * 1024 * 1024, 100 * 1024 * 1024
    return 20 * 1024 * 1024, 48 * 1024 * 1024      # v7x: 64 MiB per TensorCore


def _pick_tile_rows(h, w_pad, cin, cout, cbytes, budget):
    """Largest row tile (multiple of 8) whose pass-1 working set fits `budget`.

    With the larger v5e/v6e budgets this naturally yields th*w_pad >= 512
    (better M-fill for the 256-wide v6e/v7x MXUs) whenever H allows it.
    """
    hmax = _round_up(max(h, 8), 8)
    best, th = 8, 8
    while th <= hmax:
        m = th * w_pad
        need = (2 * th * (w_pad + 2) * cin * cbytes      # x tile (double-buffered)
                + 2 * 2 * (w_pad + 2) * cin * cbytes     # 2-row halo
                + 2 * 9 * cin * cout * cbytes            # conv weights (dbl-buffered)
                + 2 * m * 4                              # column-validity mask
                + 2 * m * cout * cbytes                  # fm tile (double-buffered)
                + 3 * (th + 2) * w_pad * cin * cbytes    # kx-shifted staging scratch
                + m * cout * 4                           # local f32 accumulator
                + m * 4)                                 # validity temp / headroom
        if need > budget:
            break
        best = th
        th += 8
    return best


# ---------------------------------------------------------------------------
# Pass 1: 3x3 conv (9 aligned-tap MXU matmuls) + folded BN1 + leaky_relu
#         -> fm row tile, plus a running masked-GAP sum across row tiles.
# ---------------------------------------------------------------------------
def _conv_bn_gap_kernel(x_ref, xh_ref, w3_ref, b1_ref, cmask_ref,   # inputs
                        fm_ref, gap_ref,                            # outputs
                        stage_ref,                                  # scratch
                        *, th, w_pad, h_valid, n_inner, slope):
    p = pl.program_id(1)
    t = pl.program_id(2)
    g = p * n_inner + t                      # global row-tile index
    cin = x_ref.shape[-1]
    m = th * w_pad                           # flat output rows in this tile

    # Build 3 kx-shifted, flattened staging buffers (the only relayout copies:
    # 3 instead of the previous 10).  Row stride w_pad is a multiple of 8, so
    # every ky tap below is an aligned, contiguous row-slice view.
    for kx in range(3):
        stage_ref[kx, 0:m] = x_ref[0, :, kx:kx + w_pad, :].reshape(m, cin)
        stage_ref[kx, m:m + 2 * w_pad] = (
            xh_ref[0, :, kx:kx + w_pad, :].reshape(2 * w_pad, cin))

    # 3x3 conv as 9 accumulated MXU matmuls (BN1 scale folded into w3);
    # accumulate in a local f32 value (no VMEM read-modify-write passes).
    acc = None
    for ky in range(3):
        base = ky * w_pad
        for kx in range(3):
            tap = stage_ref[kx, base:base + m]            # (m, cin) aligned view
            d = jnp.dot(tap, w3_ref[3 * ky + kx],
                        preferred_element_type=jnp.float32)
            acc = d if acc is None else acc + d

    y = acc + b1_ref[...]                    # folded BN1 bias, (1, Cout) bcast
    fm = jnp.where(y > 0, y, slope * y)      # leaky_relu(0.01)
    fm_ref[0] = fm.astype(fm_ref.dtype)

    # Masked GAP partial sum on the MXU: validity(1, m) @ fm(m, Cout).
    # Rows >= H and the W..W_pad alignment-tail columns hold conv-of-zero
    # garbage; they are masked here and sliced off host-side.
    rows_valid = jnp.clip(h_valid - g * th, 0, th)
    idx = jax.lax.broadcasted_iota(jnp.int32, (1, m), 1)
    valid = cmask_ref[...] * (idx < rows_valid * w_pad).astype(jnp.float32)
    part = jnp.dot(valid, fm, preferred_element_type=jnp.float32)   # (1, Cout)

    @pl.when(t == 0)
    def _():
        gap_ref[0, 0] = part

    @pl.when(t != 0)
    def _():
        gap_ref[0, 0] += part


@functools.partial(jax.jit,
                   static_argnames=("tile_rows", "row_split", "compute_dtype"))
def attention_refinement(x_nchw, params, *, tile_rows=None, row_split=None,
                         compute_dtype=jnp.bfloat16):
    """Pallas implementation of AttentionRefinementModule.forward (eval-mode BN)."""
    w3 = params["w3"]                      # (Cout, Cin, 3, 3)
    w1 = params["w1"]                      # (Cout, Cout, 1, 1)

    N, Cin, H, W = x_nchw.shape
    Cout = w3.shape[0]
    W_pad = _round_up(W, 8)                # sublane-aligned flat-row stride
    cbytes = jnp.dtype(compute_dtype).itemsize
    vmem_budget, vmem_limit = _vmem_budgets()

    # ---- fold eval-mode InPlaceABNSync (running stats) into weights/biases --
    # TODO(synk): training-mode batch statistics + cross-process sync of
    # InPlaceABNSync are not reproduced; eval-mode running stats are used.
    s1 = params["bn1_gamma"] * jax.lax.rsqrt(params["bn1_var"] + _EPS)
    b1 = params["bn1_beta"] - params["bn1_mean"] * s1
    s2 = params["bn2_gamma"] * jax.lax.rsqrt(params["bn2_var"] + _EPS)
    b2 = params["bn2_beta"] - params["bn2_mean"] * s2

    # conv3x3 weight -> (9, Cin, Cout); fold BN1 scale into output columns.
    w3_mat = jnp.transpose(w3, (2, 3, 1, 0)).reshape(9, Cin, Cout) * s1[None, None, :]
    w3_k = w3_mat.astype(compute_dtype)
    b1_k = b1.reshape(1, Cout).astype(jnp.float32)

    # 1x1 weight with BN2 scale and the 1/(H*W) GAP-mean factor folded in.
    w1_mat = w1[:, :, 0, 0].T * s2[None, :] / float(H * W)

    # ---- spatial (row) tiling -----------------------------------------------
    if tile_rows is None:
        tile_rows = _pick_tile_rows(H, W_pad, Cin, Cout, cbytes, vmem_budget)
    th = min(max(8, _round_up(tile_rows, 8)), _round_up(max(H, 8), 8))
    hp = _round_up(H, th)
    n_tiles = hp // th
    if row_split is None:                  # use both v7x TCs even at batch 1
        row_split = 2 if (n_tiles % 2 == 0 and n_tiles >= 2) else 1
    elif n_tiles % row_split != 0:
        row_split = 1
    n_inner = n_tiles // row_split

    # NCHW -> NHWC; pad: 1-px conv halo, bottom rows to reach hp, right cols to
    # reach the aligned W_pad stride.  Channels stay at their true size in HBM.
    x = jnp.transpose(x_nchw, (0, 2, 3, 1))
    x_pad = jnp.pad(x, ((0, 0), (1, hp + 1 - H), (1, W_pad + 1 - W), (0, 0)))
    x_pad = x_pad.astype(compute_dtype)            # (N, hp+2, W_pad+2, Cin)

    # Column-validity pattern for the GAP mask: [1]*W, [0]*(W_pad-W) per row.
    cmask = jnp.tile((jnp.arange(W_pad) < W).astype(jnp.float32), th)
    cmask = cmask.reshape(1, th * W_pad)

    kernel = functools.partial(_conv_bn_gap_kernel, th=th, w_pad=W_pad,
                               h_valid=H, n_inner=n_inner, slope=_LEAKY_SLOPE)
    # TODO(synk): on v7x, w3_k/b1_k could use pipeline_mode=pl.Buffered(1)
    # (constant index_map) to reclaim their double-buffer VMEM for a larger th.
    fm_flat, gap = pl.pallas_call(
        kernel,
        out_shape=(jax.ShapeDtypeStruct((N, hp * W_pad, Cout), compute_dtype),
                   jax.ShapeDtypeStruct((N, row_split, 1, Cout), jnp.float32)),
        grid=(N, row_split, n_inner),
        in_specs=[
            # main row tile of the padded activation
            pl.BlockSpec((1, th, W_pad + 2, Cin),
                         lambda n, p, t: (n, p * n_inner + t, 0, 0)),
            # 2-row bottom halo (same array, offset by one tile)
            pl.BlockSpec((1, 2, W_pad + 2, Cin),
                         lambda n, p, t: (n, (p * n_inner + t + 1) * (th // 2), 0, 0)),
            pl.BlockSpec((9, Cin, Cout), lambda n, p, t: (0, 0, 0)),
            pl.BlockSpec((1, Cout), lambda n, p, t: (0, 0)),
            pl.BlockSpec((1, th * W_pad), lambda n, p, t: (0, 0)),
        ],
        out_specs=(
            pl.BlockSpec((1, th * W_pad, Cout),
                         lambda n, p, t: (n, p * n_inner + t, 0)),
            pl.BlockSpec((1, 1, 1, Cout), lambda n, p, t: (n, p, 0, 0)),  # GAP acc
        ),
        scratch_shapes=[
            pltpu.VMEM((3, (th + 2) * W_pad, Cin), compute_dtype),  # kx-shift stage
        ],
        compiler_params=pltpu.CompilerParams(
            dimension_semantics=("parallel", "parallel", "arbitrary"),
            vmem_limit_bytes=vmem_limit),
    )(x_pad, x_pad, w3_k, b1_k, cmask)

    # ---- attention branch: GAP mean -> 1x1 conv -> BN2 -> sigmoid -----------
    gap_sum = jnp.sum(gap, axis=1)[:, 0, :]                     # (N, Cout)
    atten = jax.nn.sigmoid(gap_sum @ w1_mat + b2[None, :])      # (N, Cout) f32

    # ---- channel-attention rescale, fused by XLA with the slice + NCHW
    #      transpose (no extra standalone HBM pass over fm).
    fm4 = fm_flat.reshape(N, hp, W_pad, Cout)[:, :H, :W, :]
    out = fm4 * atten[:, None, None, :]
    return jnp.transpose(out, (0, 3, 1, 2)).astype(x_nchw.dtype)


# ---------------------------------------------------------------------------
# Pure-JAX reference (lax.conv; independent of the Pallas path).
# ---------------------------------------------------------------------------
def _reference(x, params):
    dn = ("NCHW", "OIHW", "NCHW")
    y = jax.lax.conv_general_dilated(x, params["w3"], (1, 1), ((1, 1), (1, 1)),
                                     dimension_numbers=dn)
    s1 = params["bn1_gamma"] / jnp.sqrt(params["bn1_var"] + _EPS)
    b1 = params["bn1_beta"] - params["bn1_mean"] * s1
    y = y * s1[None, :, None, None] + b1[None, :, None, None]
    fm = jnp.where(y > 0, y, _LEAKY_SLOPE * y)

    gap = fm.mean(axis=(2, 3), keepdims=True)
    a = jax.lax.conv_general_dilated(gap, params["w1"], (1, 1), ((0, 0), (0, 0)),
                                     dimension_numbers=dn)
    s2 = params["bn2_gamma"] / jnp.sqrt(params["bn2_var"] + _EPS)
    b2 = params["bn2_beta"] - params["bn2_mean"] * s2
    a = a * s2[None, :, None, None] + b2[None, :, None, None]
    atten = jax.nn.sigmoid(a)
    return fm * atten


def _init_params(key, cin, cout):
    ks = jax.random.split(key, 8)
    # kaiming_normal_(a=1): std = sqrt(2 / ((1 + a^2) * fan_in)) = sqrt(1 / fan_in)
    std3 = (1.0 / (cin * 9)) ** 0.5
    std1 = (1.0 / cout) ** 0.5
    return {
        "w3": jax.random.normal(ks[0], (cout, cin, 3, 3), jnp.float32) * std3,
        "w1": jax.random.normal(ks[1], (cout, cout, 1, 1), jnp.float32) * std1,
        "bn1_gamma": jax.random.uniform(ks[2], (cout,), jnp.float32, 0.5, 1.5),
        "bn1_beta": jax.random.normal(ks[3], (cout,), jnp.float32) * 0.1,
        "bn1_mean": jax.random.normal(ks[4], (cout,), jnp.float32) * 0.1,
        "bn1_var": jnp.abs(jax.random.normal(ks[5], (cout,), jnp.float32)) * 0.1 + 1.0,
        "bn2_gamma": jax.random.uniform(ks[6], (cout,), jnp.float32, 0.5, 1.5),
        "bn2_beta": jax.random.normal(ks[7], (cout,), jnp.float32) * 0.1,
        "bn2_mean": jnp.zeros((cout,), jnp.float32),
        "bn2_var": jnp.ones((cout,), jnp.float32),
    }


if __name__ == "__main__":
    key = jax.random.PRNGKey(0)
    kx1, kx2, kp1, kp2 = jax.random.split(key, 4)

    # Config A: N=2, Cin=4, Cout=8, 16x16 — exercises the row_split=2 path
    # (2 row tiles of 8) and, separately, the accumulating "arbitrary" axis.
    N, Cin, Cout, H, W = 2, 4, 8, 16, 16
    x = jax.random.normal(kx1, (N, Cin, H, W), jnp.float32)
    params = _init_params(kp1, Cin, Cout)
    ref = jax.block_until_ready(_reference(x, params))

    out = jax.block_until_ready(
        attention_refinement(x, params, tile_rows=8, compute_dtype=jnp.float32))
    assert out.shape == (N, Cout, H, W)
    np.testing.assert_allclose(np.asarray(out), np.asarray(ref),
                               rtol=1e-4, atol=1e-4)

    out_rs1 = jax.block_until_ready(
        attention_refinement(x, params, tile_rows=8, row_split=1,
                             compute_dtype=jnp.float32))
    np.testing.assert_allclose(np.asarray(out_rs1), np.asarray(ref),
                               rtol=1e-4, atol=1e-4)

    # Default path: auto tile picker + bf16 MXU operands (f32 accumulation).
    out_bf = jax.block_until_ready(attention_refinement(x, params))
    np.testing.assert_allclose(np.asarray(out_bf), np.asarray(ref),
                               rtol=5e-2, atol=5e-2)

    # Config B: odd channels + non-multiple-of-8 spatial dims — exercises the
    # W_pad column mask, partial last row tile, and unpadded-channel path.
    N2, Cin2, Cout2, H2, W2 = 1, 3, 8, 10, 12
    x2 = jax.random.normal(kx2, (N2, Cin2, H2, W2), jnp.float32)
    params2 = _init_params(kp2, Cin2, Cout2)
    ref2 = jax.block_until_ready(_reference(x2, params2))
    out2 = jax.block_until_ready(
        attention_refinement(x2, params2, tile_rows=8, compute_dtype=jnp.float32))
    assert out2.shape == (N2, Cout2, H2, W2)
    np.testing.assert_allclose(np.asarray(out2), np.asarray(ref2),
                               rtol=1e-4, atol=1e-4)

    print("KERNEL_OK")
</pallas_src>

<mosaic_0001>
module attributes {stable_mosaic.version = 11 : i64} {
  func.func @_conv_bn_gap_kernel(%arg0: i32, %arg1: i32, %arg2: i32, %arg3: memref<1x8x18x4xf32, #tpu.memory_space<vmem>>, %arg4: memref<1x2x18x4xf32, #tpu.memory_space<vmem>>, %arg5: memref<9x4x8xf32, #tpu.memory_space<vmem>>, %arg6: memref<1x8xf32, #tpu.memory_space<vmem>>, %arg7: memref<1x128xf32, #tpu.memory_space<vmem>>, %arg8: memref<1x128x8xf32, #tpu.memory_space<vmem>>, %arg9: memref<1x1x1x8xf32, #tpu.memory_space<vmem>>, %arg10: memref<3x160x4xf32, #tpu.memory_space<vmem>>) attributes {dimension_semantics = [#tpu.dimension_semantics<parallel>, #tpu.dimension_semantics<parallel>, #tpu.dimension_semantics<arbitrary>], iteration_bounds = array<i64: 2, 2, 1>, scalar_prefetch = 0 : i64, scratch_operands = 1 : i64, tpu.core_type = #tpu.core_type<tc>, window_params = [{transform_indices = @transform_0, window_bounds = array<i64: 1, 8, 18, 4>}, {transform_indices = @transform_1, window_bounds = array<i64: 1, 2, 18, 4>}, {pipeline_mode = #tpu.pipeline_mode<synchronous>, transform_indices = @transform_2, window_bounds = array<i64: 9, 4, 8>}, {pipeline_mode = #tpu.pipeline_mode<synchronous>, transform_indices = @transform_3, window_bounds = array<i64: 1, 8>}, {pipeline_mode = #tpu.pipeline_mode<synchronous>, transform_indices = @transform_4, window_bounds = array<i64: 1, 128>}, {transform_indices = @transform_5, window_bounds = array<i64: 1, 128, 8>}, {transform_indices = @transform_6, window_bounds = array<i64: 1, 1, 1, 8>}]} {
    %c1_i32 = arith.constant 1 : i32
    %0 = arith.muli %arg1, %c1_i32 : i32
    %1 = arith.addi %0, %arg2 : i32
    %c0 = arith.constant 0 : index
    %c0_0 = arith.constant 0 : index
    %c0_1 = arith.constant 0 : index
    %c0_2 = arith.constant 0 : index
    %2 = vector.load %arg3[%c0, %c0_0, %c0_1, %c0_2] : memref<1x8x18x4xf32, #tpu.memory_space<vmem>>, vector<1x8x16x4xf32>
    %3 = vector.shape_cast %2 : vector<1x8x16x4xf32> to vector<8x16x4xf32>
    %4 = vector.shape_cast %3 : vector<8x16x4xf32> to vector<128x4xf32>
    %c0_3 = arith.constant 0 : index
    %c0_4 = arith.constant 0 : index
    %c0_5 = arith.constant 0 : index
    %5 = vector.load %arg10[%c0_3, %c0_4, %c0_5] : memref<3x160x4xf32, #tpu.memory_space<vmem>>, vector<1x128x4xf32>
    %6 = vector.shape_cast %5 : vector<1x128x4xf32> to vector<128x4xf32>
    %7 = vector.shape_cast %4 : vector<128x4xf32> to vector<1x128x4xf32>
    tpu.vector_store %arg10[%c0_3, %c0_4, %c0_5], %7 {strides = array<i32>} : memref<3x160x4xf32, #tpu.memory_space<vmem>>, vector<1x128x4xf32>,
    %c0_6 = arith.constant 0 : index
    %c0_7 = arith.constant 0 : index
    %c0_8 = arith.constant 0 : index
    %c0_9 = arith.constant 0 : index
    %8 = vector.load %arg4[%c0_6, %c0_7, %c0_8, %c0_9] : memref<1x2x18x4xf32, #tpu.memory_space<vmem>>, vector<1x2x16x4xf32>
    %9 = vector.shape_cast %8 : vector<1x2x16x4xf32> to vector<2x16x4xf32>
    %10 = vector.shape_cast %9 : vector<2x16x4xf32> to vector<32x4xf32>
    %c0_10 = arith.constant 0 : index
    %c128 = arith.constant 128 : index
    %c0_11 = arith.constant 0 : index
    %11 = vector.load %arg10[%c0_10, %c128, %c0_11] : memref<3x160x4xf32, #tpu.memory_space<vmem>>, vector<1x32x4xf32>
    %12 = vector.shape_cast %11 : vector<1x32x4xf32> to vector<32x4xf32>
    %13 = vector.shape_cast %10 : vector<32x4xf32> to vector<1x32x4xf32>
    tpu.vector_store %arg10[%c0_10, %c128, %c0_11], %13 {strides = array<i32>} : memref<3x160x4xf32, #tpu.memory_space<vmem>>, vector<1x32x4xf32>,
    %c0_12 = arith.constant 0 : index
    %c0_13 = arith.constant 0 : index
    %c1 = arith.constant 1 : index
    %c0_14 = arith.constant 0 : index
    %14 = vector.load %arg3[%c0_12, %c0_13, %c1, %c0_14] : memref<1x8x18x4xf32, #tpu.memory_space<vmem>>, vector<1x8x16x4xf32>
    %15 = vector.shape_cast %14 : vector<1x8x16x4xf32> to vector<8x16x4xf32>
    %16 = vector.shape_cast %15 : vector<8x16x4xf32> to vector<128x4xf32>
    %c1_15 = arith.constant 1 : index
    %c0_16 = arith.constant 0 : index
    %c0_17 = arith.constant 0 : index
    %17 = vector.load %arg10[%c1_15, %c0_16, %c0_17] : memref<3x160x4xf32, #tpu.memory_space<vmem>>, vector<1x128x4xf32>
    %18 = vector.shape_cast %17 : vector<1x128x4xf32> to vector<128x4xf32>
    %19 = vector.shape_cast %16 : vector<128x4xf32> to vector<1x128x4xf32>
    tpu.vector_store %arg10[%c1_15, %c0_16, %c0_17], %19 {strides = array<i32>} : memref<3x160x4xf32, #tpu.memory_space<vmem>>, vector<1x128x4xf32>,
    %c0_18 = arith.constant 0 : index
    %c0_19 = arith.constant 0 : index
    %c1_20 = arith.constant 1 : index
    %c0_21 = arith.constant 0 : index
    %20 = vector.load %arg4[%c0_18, %c0_19, %c1_20, %c0_21] : memref<1x2x18x4xf32, #tpu.memory_space<vmem>>, vector<1x2x16x4xf32>
    %21 = vector.shape_cast %20 : vector<1x2x16x4xf32> to vector<2x16x4xf32>
    %22 = vector.shape_cast %21 : vector<2x16x4xf32> to vector<32x4xf32>
    %c1_22 = arith.constant 1 : index
    %c128_23 = arith.constant 128 : index
    %c0_24 = arith.constant 0 : index
    %23 = vector.load %arg10[%c1_22, %c128_23, %c0_24] : memref<3x160x4xf32, #tpu.memory_space<vmem>>, vector<1x32x4xf32>
    %24 = vector.shape_cast %23 : vector<1x32x4xf32> to vector<32x4xf32>
    %25 = vector.shape_cast %22 : vector<32x4xf32> to vector<1x32x4xf32>
    tpu.vector_store %arg10[%c1_22, %c128_23, %c0_24], %25 {strides = array<i32>} : memref<3x160x4xf32, #tpu.memory_space<vmem>>, vector<1x32x4xf32>,
    %c0_25 = arith.constant 0 : index
    %c0_26 = arith.constant 0 : index
    %c2 = arith.constant 2 : index
    %c0_27 = arith.constant 0 : index
    %26 = vector.load %arg3[%c0_25, %c0_26, %c2, %c0_27] : memref<1x8x18x4xf32, #tpu.memory_space<vmem>>, vector<1x8x16x4xf32>
    %27 = vector.shape_cast %26 : vector<1x8x16x4xf32> to vector<8x16x4xf32>
    %28 = vector.shape_cast %27 : vector<8x16x4xf32> to vector<128x4xf32>
    %c2_28 = arith.constant 2 : index
    %c0_29 = arith.constant 0 : index
    %c0_30 = arith.constant 0 : index
    %29 = vector.load %arg10[%c2_28, %c0_29, %c0_30] : memref<3x160x4xf32, #tpu.memory_space<vmem>>, vector<1x128x4xf32>
    %30 = vector.shape_cast %29 : vector<1x128x4xf32> to vector<128x4xf32>
    %31 = vector.shape_cast %28 : vector<128x4xf32> to vector<1x128x4xf32>
    tpu.vector_store %arg10[%c2_28, %c0_29, %c0_30], %31 {strides = array<i32>} : memref<3x160x4xf32, #tpu.memory_space<vmem>>, vector<1x128x4xf32>,
    %c0_31 = arith.constant 0 : index
    %c0_32 = arith.constant 0 : index
    %c2_33 = arith.constant 2 : index
    %c0_34 = arith.constant 0 : index
    %32 = vector.load %arg4[%c0_31, %c0_32, %c2_33, %c0_34] : memref<1x2x18x4xf32, #tpu.memory_space<vmem>>, vector<1x2x16x4xf32>
    %33 = vector.shape_cast %32 : vector<1x2x16x4xf32> to vector<2x16x4xf32>
    %34 = vector.shape_cast %33 : vector<2x16x4xf32> to vector<32x4xf32>
    %c2_35 = arith.constant 2 : index
    %c128_36 = arith.constant 128 : index
    %c0_37 = arith.constant 0 : index
    %35 = vector.load %arg10[%c2_35, %c128_36, %c0_37] : memref<3x160x4xf32, #tpu.memory_space<vmem>>, vector<1x32x4xf32>
    %36 = vector.shape_cast %35 : vector<1x32x4xf32> to vector<32x4xf32>
    %37 = vector.shape_cast %34 : vector<32x4xf32> to vector<1x32x4xf32>
    tpu.vector_store %arg10[%c2_35, %c128_36, %c0_37], %37 {strides = array<i32>} : memref<3x160x4xf32, #tpu.memory_space<vmem>>, vector<1x32x4xf32>,
    %c0_38 = arith.constant 0 : index
    %c0_39 = arith.constant 0 : index
    %c0_40 = arith.constant 0 : index
    %38 = vector.load %arg10[%c0_38, %c0_39, %c0_40] : memref<3x160x4xf32, #tpu.memory_space<vmem>>, vector<1x128x4xf32>
    %39 = vector.shape_cast %38 : vector<1x128x4xf32> to vector<128x4xf32>
    %c0_41 = arith.constant 0 : index
    %c0_42 = arith.constant 0 : index
    %c0_43 = arith.constant 0 : index
    %40 = vector.load %arg5[%c0_41, %c0_42, %c0_43] : memref<9x4x8xf32, #tpu.memory_space<vmem>>, vector<1x4x8xf32>
    %41 = vector.shape_cast %40 : vector<1x4x8xf32> to vector<4x8xf32>
    %cst = arith.constant dense<0.000000e+00> : vector<128x8xf32>
    %42 = tpu.matmul %39, %41, %cst {dimension_numbers = #tpu.dot_dimension_numbers<[1], [0], [0], [1], [0, 0, 1, 1], [], []>} : vector<128x4xf32>, vector<4x8xf32>, vector<128x8xf32> -> vector<128x8xf32>
    %c1_44 = arith.constant 1 : index
    %c0_45 = arith.constant 0 : index
    %c0_46 = arith.constant 0 : index
    %43 = vector.load %arg10[%c1_44, %c0_45, %c0_46] : memref<3x160x4xf32, #tpu.memory_space<vmem>>, vector<1x128x4xf32>
    %44 = vector.shape_cast %43 : vector<1x128x4xf32> to vector<128x4xf32>
    %c1_47 = arith.constant 1 : index
    %c0_48 = arith.constant 0 : index
    %c0_49 = arith.constant 0 : index
    %45 = vector.load %arg5[%c1_47, %c0_48, %c0_49] : memref<9x4x8xf32, #tpu.memory_space<vmem>>, vector<1x4x8xf32>
    %46 = vector.shape_cast %45 : vector<1x4x8xf32> to vector<4x8xf32>
    %cst_50 = arith.constant dense<0.000000e+00> : vector<128x8xf32>
    %47 = tpu.matmul %44, %46, %cst_50 {dimension_numbers = #tpu.dot_dimension_numbers<[1], [0], [0], [1], [0, 0, 1, 1], [], []>} : vector<128x4xf32>, vector<4x8xf32>, vector<128x8xf32> -> vector<128x8xf32>
    %48 = arith.addf %42, %47 : vector<128x8xf32>
    %c2_51 = arith.constant 2 : index
    %c0_52 = arith.constant 0 : index
    %c0_53 = arith.constant 0 : index
    %49 = vector.load %arg10[%c2_51, %c0_52, %c0_53] : memref<3x160x4xf32, #tpu.memory_space<vmem>>, vector<1x128x4xf32>
    %50 = vector.shape_cast %49 : vector<1x128x4xf32> to vector<128x4xf32>
    %c2_54 = arith.constant 2 : index
    %c0_55 = arith.constant 0 : index
    %c0_56 = arith.constant 0 : index
    %51 = vector.load %arg5[%c2_54, %c0_55, %c0_56] : memref<9x4x8xf32, #tpu.memory_space<vmem>>, vector<1x4x8xf32>
    %52 = vector.shape_cast %51 : vector<1x4x8xf32> to vector<4x8xf32>
    %cst_57 = arith.constant dense<0.000000e+00> : vector<128x8xf32>
    %53 = tpu.matmul %50, %52, %cst_57 {dimension_numbers = #tpu.dot_dimension_numbers<[1], [0], [0], [1], [0, 0, 1, 1], [], []>} : vector<128x4xf32>, vector<4x8xf32>, vector<128x8xf32> -> vector<128x8xf32>
    %54 = arith.addf %48, %53 : vector<128x8xf32>
    %c0_58 = arith.constant 0 : index
    %c16 = arith.constant 16 : index
    %c0_59 = arith.constant 0 : index
    %55 = vector.load %arg10[%c0_58, %c16, %c0_59] : memref<3x160x4xf32, #tpu.memory_space<vmem>>, vector<1x128x4xf32>
    %56 = vector.shape_cast %55 : vector<1x128x4xf32> to vector<128x4xf32>
    %c3 = arith.constant 3 : index
    %c0_60 = arith.constant 0 : index
    %c0_61 = arith.constant 0 : index
    %57 = vector.load %arg5[%c3, %c0_60, %c0_61] : memref<9x4x8xf32, #tpu.memory_space<vmem>>, vector<1x4x8xf32>
    %58 = vector.shape_cast %57 : vector<1x4x8xf32> to vector<4x8xf32>
    %cst_62 = arith.constant dense<0.000000e+00> : vector<128x8xf32>
    %59 = tpu.matmul %56, %58, %cst_62 {dimension_numbers = #tpu.dot_dimension_numbers<[1], [0], [0], [1], [0, 0, 1, 1], [], []>} : vector<128x4xf32>, vector<4x8xf32>, vector<128x8xf32> -> vector<128x8xf32>
    %60 = arith.addf %54, %59 : vector<128x8xf32>
    %c1_63 = arith.constant 1 : index
    %c16_64 = arith.constant 16 : index
    %c0_65 = arith.constant 0 : index
    %61 = vector.load %arg10[%c1_63, %c16_64, %c0_65] : memref<3x160x4xf32, #tpu.memory_space<vmem>>, vector<1x128x4xf32>
    %62 = vector.shape_cast %61 : vector<1x128x4xf32> to vector<128x4xf32>
    %c4 = arith.constant 4 : index
    %c0_66 = arith.constant 0 : index
    %c0_67 = arith.constant 0 : index
    %63 = vector.load %arg5[%c4, %c0_66, %c0_67] : memref<9x4x8xf32, #tpu.memory_space<vmem>>, vector<1x4x8xf32>
    %64 = vector.shape_cast %63 : vector<1x4x8xf32> to vector<4x8xf32>
    %cst_68 = arith.constant dense<0.000000e+00> : vector<128x8xf32>
    %65 = tpu.matmul %62, %64, %cst_68 {dimension_numbers = #tpu.dot_dimension_numbers<[1], [0], [0], [1], [0, 0, 1, 1], [], []>} : vector<128x4xf32>, vector<4x8xf32>, vector<128x8xf32> -> vector<128x8xf32>
    %66 = arith.addf %60, %65 : vector<128x8xf32>
    %c2_69 = arith.constant 2 : index
    %c16_70 = arith.constant 16 : index
    %c0_71 = arith.constant 0 : index
    %67 = vector.load %arg10[%c2_69, %c16_70, %c0_71] : memref<3x160x4xf32, #tpu.memory_space<vmem>>, vector<1x128x4xf32>
    %68 = vector.shape_cast %67 : vector<1x128x4xf32> to vector<128x4xf32>
    %c5 = arith.constant 5 : index
    %c0_72 = arith.constant 0 : index
    %c0_73 = arith.constant 0 : index
    %69 = vector.load %arg5[%c5, %c0_72, %c0_73] : memref<9x4x8xf32, #tpu.memory_space<vmem>>, vector<1x4x8xf32>
    %70 = vector.shape_cast %69 : vector<1x4x8xf32> to vector<4x8xf32>
    %cst_74 = arith.constant dense<0.000000e+00> : vector<128x8xf32>
    %71 = tpu.matmul %68, %70, %cst_74 {dimension_numbers = #tpu.dot_dimension_numbers<[1], [0], [0], [1], [0, 0, 1, 1], [], []>} : vector<128x4xf32>, vector<4x8xf32>, vector<128x8xf32> -> vector<128x8xf32>
    %72 = arith.addf %66, %71 : vector<128x8xf32>
    %c0_75 = arith.constant 0 : index
    %c32 = arith.constant 32 : index
    %c0_76 = arith.constant 0 : index
    %73 = vector.load %arg10[%c0_75, %c32, %c0_76] : memref<3x160x4xf32, #tpu.memory_space<vmem>>, vector<1x128x4xf32>
    %74 = vector.shape_cast %73 : vector<1x128x4xf32> to vector<128x4xf32>
    %c6 = arith.constant 6 : index
    %c0_77 = arith.constant 0 : index
    %c0_78 = arith.constant 0 : index
    %75 = vector.load %arg5[%c6, %c0_77, %c0_78] : memref<9x4x8xf32, #tpu.memory_space<vmem>>, vector<1x4x8xf32>
    %76 = vector.shape_cast %75 : vector<1x4x8xf32> to vector<4x8xf32>
    %cst_79 = arith.constant dense<0.000000e+00> : vector<128x8xf32>
    %77 = tpu.matmul %74, %76, %cst_79 {dimension_numbers = #tpu.dot_dimension_numbers<[1], [0], [0], [1], [0, 0, 1, 1], [], []>} : vector<128x4xf32>, vector<4x8xf32>, vector<128x8xf32> -> vector<128x8xf32>
    %78 = arith.addf %72, %77 : vector<128x8xf32>
    %c1_80 = arith.constant 1 : index
    %c32_81 = arith.constant 32 : index
    %c0_82 = arith.constant 0 : index
    %79 = vector.load %arg10[%c1_80, %c32_81, %c0_82] : memref<3x160x4xf32, #tpu.memory_space<vmem>>, vector<1x128x4xf32>
    %80 = vector.shape_cast %79 : vector<1x128x4xf32> to vector<128x4xf32>
    %c7 = arith.constant 7 : index
    %c0_83 = arith.constant 0 : index
    %c0_84 = arith.constant 0 : index
    %81 = vector.load %arg5[%c7, %c0_83, %c0_84] : memref<9x4x8xf32, #tpu.memory_space<vmem>>, vector<1x4x8xf32>
    %82 = vector.shape_cast %81 : vector<1x4x8xf32> to vector<4x8xf32>
    %cst_85 = arith.constant dense<0.000000e+00> : vector<128x8xf32>
    %83 = tpu.matmul %80, %82, %cst_85 {dimension_numbers = #tpu.dot_dimension_numbers<[1], [0], [0], [1], [0, 0, 1, 1], [], []>} : vector<128x4xf32>, vector<4x8xf32>, vector<128x8xf32> -> vector<128x8xf32>
    %84 = arith.addf %78, %83 : vector<128x8xf32>
    %c2_86 = arith.constant 2 : index
    %c32_87 = arith.constant 32 : index
    %c0_88 = arith.constant 0 : index
    %85 = vector.load %arg10[%c2_86, %c32_87, %c0_88] : memref<3x160x4xf32, #tpu.memory_space<vmem>>, vector<1x128x4xf32>
    %86 = vector.shape_cast %85 : vector<1x128x4xf32> to vector<128x4xf32>
    %c8 = arith.constant 8 : index
    %c0_89 = arith.constant 0 : index
    %c0_90 = arith.constant 0 : index
    %87 = vector.load %arg5[%c8, %c0_89, %c0_90] : memref<9x4x8xf32, #tpu.memory_space<vmem>>, vector<1x4x8xf32>
    %88 = vector.shape_cast %87 : vector<1x4x8xf32> to vector<4x8xf32>
    %cst_91 = arith.constant dense<0.000000e+00> : vector<128x8xf32>
    %89 = tpu.matmul %86, %88, %cst_91 {dimension_numbers = #tpu.dot_dimension_numbers<[1], [0], [0], [1], [0, 0, 1, 1], [], []>} : vector<128x4xf32>, vector<4x8xf32>, vector<128x8xf32> -> vector<128x8xf32>
    %90 = arith.addf %84, %89 : vector<128x8xf32>
    %c0_92 = arith.constant 0 : index
    %c0_93 = arith.constant 0 : index
    %91 = vector.load %arg6[%c0_92, %c0_93] : memref<1x8xf32, #tpu.memory_space<vmem>>, vector<1x8xf32>
    %92 = vector.broadcast %91 : vector<1x8xf32> to vector<128x8xf32>
    %93 = arith.addf %90, %92 : vector<128x8xf32>
    %cst_94 = arith.constant 0.000000e+00 : f32
    %94 = vector.broadcast %cst_94 : f32 to vector<128x8xf32>
    %95 = arith.cmpf ogt, %93, %94 : vector<128x8xf32>
    %cst_95 = arith.constant 0.00999999977 : f32
    %96 = vector.broadcast %cst_95 : f32 to vector<128x8xf32>
    %97 = arith.mulf %96, %93 : vector<128x8xf32>
    %98 = arith.select %95, %93, %97 : vector<128x8xi1>, vector<128x8xf32>
    %c0_96 = arith.constant 0 : index
    %c0_97 = arith.constant 0 : index
    %c0_98 = arith.constant 0 : index
    %99 = vector.load %arg8[%c0_96, %c0_97, %c0_98] : memref<1x128x8xf32, #tpu.memory_space<vmem>>, vector<1x128x8xf32>
    %100 = vector.shape_cast %99 : vector<1x128x8xf32> to vector<128x8xf32>
    %101 = vector.shape_cast %98 : vector<128x8xf32> to vector<1x128x8xf32>
    tpu.vector_store %arg8[%c0_96, %c0_97, %c0_98], %101 {strides = array<i32>} : memref<1x128x8xf32, #tpu.memory_space<vmem>>, vector<1x128x8xf32>,
    %c8_i32 = arith.constant 8 : i32
    %102 = arith.muli %1, %c8_i32 : i32
    %c16_i32 = arith.constant 16 : i32
    %103 = arith.subi %c16_i32, %102 : i32
    %c0_i32 = arith.constant 0 : i32
    %c8_i32_99 = arith.constant 8 : i32
    %104 = arith.maxsi %c0_i32, %103 : i32
    %105 = arith.minsi %c8_i32_99, %104 : i32
    %106 = tpu.iota {dimensions = array<i32: 1>} : vector<1x128xi32>
    %c0_100 = arith.constant 0 : index
    %c0_101 = arith.constant 0 : index
    %107 = vector.load %arg7[%c0_100, %c0_101] : memref<1x128xf32, #tpu.memory_space<vmem>>, vector<1x128xf32>
    %c16_i32_102 = arith.constant 16 : i32
    %108 = arith.muli %105, %c16_i32_102 : i32
    %109 = vector.broadcast %108 : i32 to vector<1x128xi32>
    %110 = arith.cmpi slt, %106, %109 : vector<1x128xi32>
    %111 = arith.extui %110 : vector<1x128xi1> to vector<1x128xi32>
    %112 = arith.sitofp %111 : vector<1x128xi32> to vector<1x128xf32>
    %113 = arith.mulf %107, %112 : vector<1x128xf32>
    %cst_103 = arith.constant dense<0.000000e+00> : vector<1x8xf32>
    %114 = tpu.matmul %113, %98, %cst_103 {dimension_numbers = #tpu.dot_dimension_numbers<[1], [0], [0], [1], [0, 0, 1, 1], [], []>} : vector<1x128xf32>, vector<128x8xf32>, vector<1x8xf32> -> vector<1x8xf32>
    %c0_i32_104 = arith.constant 0 : i32
    %115 = arith.cmpi eq, %arg2, %c0_i32_104 : i32
    %116 = arith.extui %115 : i1 to i32
    %c0_i32_105 = arith.constant 0 : i32
    %117 = arith.cmpi ne, %116, %c0_i32_105 : i32
    scf.if %117 {
      %c0_108 = arith.constant 0 : index
      %c0_109 = arith.constant 0 : index
      %c0_110 = arith.constant 0 : index
      %c0_111 = arith.constant 0 : index
      %121 = vector.load %arg9[%c0_108, %c0_109, %c0_110, %c0_111] : memref<1x1x1x8xf32, #tpu.memory_space<vmem>>, vector<1x1x1x8xf32>
      %122 = vector.shape_cast %121 : vector<1x1x1x8xf32> to vector<1x8xf32>
      %123 = vector.shape_cast %114 : vector<1x8xf32> to vector<1x1x1x8xf32>
      tpu.vector_store %arg9[%c0_108, %c0_109, %c0_110, %c0_111], %123 {strides = array<i32>} : memref<1x1x1x8xf32, #tpu.memory_space<vmem>>, vector<1x1x1x8xf32>,
    } else {
    }
    %c0_i32_106 = arith.constant 0 : i32
    %118 = arith.cmpi ne, %arg2, %c0_i32_106 : i32
    %119 = arith.extui %118 : i1 to i32
    %c0_i32_107 = arith.constant 0 : i32
    %120 = arith.cmpi ne, %119, %c0_i32_107 : i32
    scf.if %120 {
      %c0_108 = arith.constant 0 : index
      %c0_109 = arith.constant 0 : index
      %c0_110 = arith.constant 0 : index
      %c0_111 = arith.constant 0 : index
      %121 = vector.load %arg9[%c0_108, %c0_109, %c0_110, %c0_111] : memref<1x1x1x8xf32, #tpu.memory_space<vmem>>, vector<1x1x1x8xf32>
      %122 = vector.shape_cast %121 : vector<1x1x1x8xf32> to vector<1x8xf32>
      %123 = arith.addf %122, %114 : vector<1x8xf32>
      %c0_112 = arith.constant 0 : index
      %c0_113 = arith.constant 0 : index
      %c0_114 = arith.constant 0 : index
      %c0_115 = arith.constant 0 : index
      %124 = vector.load %arg9[%c0_112, %c0_113, %c0_114, %c0_115] : memref<1x1x1x8xf32, #tpu.memory_space<vmem>>, vector<1x1x1x8xf32>
      %125 = vector.shape_cast %124 : vector<1x1x1x8xf32> to vector<1x8xf32>
      %126 = vector.shape_cast %123 : vector<1x8xf32> to vector<1x1x1x8xf32>
      tpu.vector_store %arg9[%c0_112, %c0_113, %c0_114, %c0_115], %126 {strides = array<i32>} : memref<1x1x1x8xf32, #tpu.memory_space<vmem>>, vector<1x1x1x8xf32>,
    } else {
    }
    return
  }
  func.func @transform_0(%arg0: i32, %arg1: i32, %arg2: i32) -> (i32, i32, i32, i32) {
    %c1_i32 = arith.constant 1 : i32
    %0 = arith.muli %arg1, %c1_i32 : i32
    %1 = arith.addi %0, %arg2 : i32
    %c0_i32 = arith.constant 0 : i32
    %c0_i32_0 = arith.constant 0 : i32
    %c0_i32_1 = arith.constant 0 : i32
    return %arg0, %1, %c0_i32, %c0_i32_0 : i32, i32, i32, i32
  }
  func.func @transform_1(%arg0: i32, %arg1: i32, %arg2: i32) -> (i32, i32, i32, i32) {
    %c1_i32 = arith.constant 1 : i32
    %0 = arith.muli %arg1, %c1_i32 : i32
    %1 = arith.addi %0, %arg2 : i32
    %c1_i32_0 = arith.constant 1 : i32
    %2 = arith.addi %1, %c1_i32_0 : i32
    %c4_i32 = arith.constant 4 : i32
    %3 = arith.muli %2, %c4_i32 : i32
    %c0_i32 = arith.constant 0 : i32
    %c0_i32_1 = arith.constant 0 : i32
    %c0_i32_2 = arith.constant 0 : i32
    return %arg0, %3, %c0_i32, %c0_i32_1 : i32, i32, i32, i32
  }
  func.func @transform_2(%arg0: i32, %arg1: i32, %arg2: i32) -> (i32, i32, i32) {
    %c0_i32 = arith.constant 0 : i32
    %c0_i32_0 = arith.constant 0 : i32
    %c0_i32_1 = arith.constant 0 : i32
    %c0_i32_2 = arith.constant 0 : i32
    return %c0_i32, %c0_i32_0, %c0_i32_1 : i32, i32, i32
  }
  func.func @transform_3(%arg0: i32, %arg1: i32, %arg2: i32) -> (i32, i32) {
    %c0_i32 = arith.constant 0 : i32
    %c0_i32_0 = arith.constant 0 : i32
    %c0_i32_1 = arith.constant 0 : i32
    return %c0_i32, %c0_i32_0 : i32, i32
  }
  func.func @transform_4(%arg0: i32, %arg1: i32, %arg2: i32) -> (i32, i32) {
    %c0_i32 = arith.constant 0 : i32
    %c0_i32_0 = arith.constant 0 : i32
    %c0_i32_1 = arith.constant 0 : i32
    return %c0_i32, %c0_i32_0 : i32, i32
  }
  func.func @transform_5(%arg0: i32, %arg1: i32, %arg2: i32) -> (i32, i32, i32) {
    %c1_i32 = arith.constant 1 : i32
    %0 = arith.muli %arg1, %c1_i32 : i32
    %1 = arith.addi %0, %arg2 : i32
    %c0_i32 = arith.constant 0 : i32
    %c0_i32_0 = arith.constant 0 : i32
    return %arg0, %1, %c0_i32 : i32, i32, i32
  }
  func.func @transform_6(%arg0: i32, %arg1: i32, %arg2: i32) -> (i32, i32, i32, i32) {
    %c0_i32 = arith.constant 0 : i32
    %c0_i32_0 = arith.constant 0 : i32
    %c0_i32_1 = arith.constant 0 : i32
    return %arg0, %arg1, %c0_i32, %c0_i32_0 : i32, i32, i32, i32
  }
}

</mosaic_0001>

<bundles_post_ra>
// kernel: tile.8
= control target key start
LH: loop header
LB: loop body
LE: loop exit
PB: predicated region body
PF: predicated region fallthrough
CT: control target
= control target key end

     0   :  { %s22_s0 = inlined_call_operand.vmem [shape: f32[16], index: 0, kind: input, shape index: {}]   ;;  %s23_s1 = inlined_call_operand.vmem [shape: f32[8,16], index: 1, kind: output, shape index: {}]  }
   0x1   :  { %v4_v0 = vld [vmem:[%s22_s0] ss:$0 sm:$0xff] }
   0x2   :  { %5 = vst [vmem:[%s23_s1] sm:$0xff] %v4_v0 }

// kernel: tile.9
= control target key start
LH: loop header
LB: loop body
LE: loop exit
PB: predicated region body
PF: predicated region fallthrough
CT: control target
= control target key end

     0   :  { %s67_s10 = smov 112   ;;  %s68_s11 = smov 80   ;;  %vm3_vm0 = vcmask 130048   ;;  %vm9_vm1 = vcmask 1048448   ;;  %vm15_vm2 = vcmask 917248   ;;  %vm21_vm3 = vcmask 786048   ;;  %s111_s0 = inlined_call_operand.vmem [shape: f32[8,16], index: 0, kind: input, shape index: {}]   ;;  %s112_s1 = inlined_call_operand.vmem [shape: f32[1,128], index: 1, kind: output, shape index: {}]  }
   0x1   :  { %v53_v0 = vld [vmem:[%s111_s0 + $0x7] sm:$0x1]   ;;  %v55_v1 = vld [vmem:[%s111_s0 + $0x5] sm:$0x1]   ;;  %v54_v2 = vld [vmem:[%s111_s0 + $0x6] sm:$0x1]  }
   0x2   :  { %7 = vrot.lane.b32.xlu0 %v53_v0, %s67_s10  ;;  %19 = vrot.lane.b32.xlu1 %v55_v1, %s68_s11  ;;  %v56_v3 = vld [vmem:[%s111_s0 + $0x4] sm:$0x1]   ;;  %v2_v4 = vld [vmem:[%s111_s0] sm:$0x1]   ;;  %s69_s18 = smov 96   ;;  %s70_s19 = smov 64  }
   0x3   :  { %4 = vst.msk [vmem:[#allocation0] sm:$0x1] %vm3_vm0, %v2_v4   ;;  %v57_v5 = vld [vmem:[%s111_s0 + $0x3] sm:$0x1]   ;;  %v58_v6 = vld [vmem:[%s111_s0 + $0x2] sm:$0x1]  }
   0x4   :  { %s71_s24 = smov 48   ;;  %s72_s25 = smov 32   ;;  %v59_v7 = vld [vmem:[%s111_s0 + $0x1] sm:$0x1]   ;;  %vm27_vm4 = vcmask 654848   ;;  %vm33_vm5 = vcmask 523648  }
   0x5   :  { %s73_s0 = smov 16   ;;  %vm39_vm6 = vcmask 392448   ;;  %vm45_vm7 = vcmask 261248  }
   0x6   :  { %13 = vrot.lane.b32.xlu0 %v54_v2, %s69_s18  ;;  %25 = vrot.lane.b32.xlu1 %v56_v3, %s70_s19 }
   0xa   :  { %31 = vrot.lane.b32.xlu0 %v57_v5, %s71_s24  ;;  %37 = vrot.lane.b32.xlu1 %v58_v6, %s72_s25 }
   0xe   :  { %43 = vrot.lane.b32.xlu0 %v59_v7, %s73_s0 }
  0x74   :  { %v8_v8 = vpop.permute.xlu0 %7   ;;  %v20_v9 = vpop.permute.xlu1 %19  }
  0x75   :  { %10 = vst.msk [vmem:[#allocation0] sm:$0x1] %vm9_vm1, %v8_v8  }
  0x78   :  { %v14_v10 = vpop.permute.xlu0 %13   ;;  %v26_v11 = vpop.permute.xlu1 %25  }
  0x79   :  { %16 = vst.msk [vmem:[#allocation0] sm:$0x1] %vm15_vm2, %v14_v10  }
  0x7a   :  { %22 = vst.msk [vmem:[#allocation0] sm:$0x1] %vm21_vm3, %v20_v9  }
  0x7b   :  { %28 = vst.msk [vmem:[#allocation0] sm:$0x1] %vm27_vm4, %v26_v11  }
  0x7c   :  { %v32_v12 = vpop.permute.xlu0 %31   ;;  %v38_v13 = vpop.permute.xlu1 %37  }
  0x7d   :  { %34 = vst.msk [vmem:[#allocation0] sm:$0x1] %vm33_vm5, %v32_v12  }
  0x7e   :  { %40 = vst.msk [vmem:[#allocation0] sm:$0x1] %vm39_vm6, %v38_v13  }
  0x80   :  { %v44_v14 = vpop.permute.xlu0 %43  }
  0x81   :  { %46 = vst.msk [vmem:[#allocation0] sm:$0x1] %vm45_vm7, %v44_v14  }
  0x88   :  { %v50_v15 = vld [vmem:[#allocation0] sm:$0x1] }
  0x89   :  { %52 = vst [vmem:[%s112_s1] sm:$0x1] %v50_v15 }

// kernel: attention_refinement.1
= control target key start
LH: loop header
LB: loop body
LE: loop exit
PB: predicated region body
PF: predicated region fallthrough
CT: control target
= control target key end

     0   :  { %s3841_s21 = smov 0   ;;  %s3843_s22 = smov 0   ;;  %s4571_s0 = inlined_call_operand.vmem [shape: f32[2,18,18,4], index: 0, kind: input, shape index: {}, may-alias: {0,1}]   ;;  %s4572_s1 = inlined_call_operand.vmem [shape: f32[2,18,18,4], index: 1, kind: input, shape index: {}, may-alias: {0,1}]   ;;  %s4573_s2 = inlined_call_operand.vmem [shape: f32[9,4,8], index: 2, kind: input, shape index: {}]   ;;  %s4574_s3 = inlined_call_operand.vmem [shape: f32[1,8], index: 3, kind: input, shape index: {}]   ;;  %s4575_s4 = inlined_call_operand.vmem [shape: f32[1,128], index: 4, kind: input, shape index: {}]   ;;  %s4576_s5 = inlined_call_operand.vmem [shape: f32[2,256,8], index: 5, kind: output, shape index: {0}]   ;;  %s4577_s6 = inlined_call_operand.vmem [shape: f32[2,2,1,8], index: 6, kind: output, shape index: {1}]  }
   0x1   :  { %s3845_s23 = smov 0   ;;  %s3847_s24 = smov 0  }
   0x2   :  { %s3849_s25 = smov 0  }
   0x3 LB: > { %s32_s26 = sadd.s32 1, %s3793_s23  ;;  %s36_s27 = sadd.s32 1, %s3797_s24  ;;  %s3801_s25 = sphi %s3849_s25, %s17_s25   ;;  %s3797_s24 = sphi %s3847_s24, %s4581_s24   ;;  %s3793_s23 = sphi %s3845_s23, %s4580_s23   ;;  %s3789_s22 = sphi %s3843_s22, %s4579_s22   ;;  %s3785_s21 = sphi %s3841_s21, %s4578_s21  }
   0x4   : > { %p34_p0 = scmp.ge.s32.totalorder %s32_s26, 2  ;;  %p2933_p1 = scmp.ge.s32.totalorder %s3801_s25, 1 }
   0x5   : > { %p292_p2 = scmp.lt.s32.totalorder %s3801_s25, 5 }
   0x6   : > { %s4583_s26 = smov (%p34_p0, %s32_s26), 0  ;;  %s4585_s27 = smov (!%p34_p0, %s36_s27), %s3797_s24 }
   0x7   : > { %p293_p3 = pnand %p2933_p1, %p292_p2  ;;  %p38_p4 = scmp.ge.s32.totalorder %s4585_s27, 2 }
   0x8   : > { %v2943_v0 = vld [vmem:[%s4573_s2 + $0x4] sm:$0xf] (!%p293_p3)  ;;  %vm624_vm0 = vcmask (!%p293_p3), 1043456   ;;  %v3014_v1 = vld [vmem:[%s4573_s2 + $0x10] sm:$0xf] (!%p293_p3)  ;;  %s3880_s8 = sshll.u32 (!%p293_p3), %s3785_s21, 3 }
   0x9   : > { %s4587_s27 = smov (%p38_p4, %s4585_s27), 0  ;;  %296 = sbr.rel (%p293_p3) target bundleno = 632 (0x278), region = 40 }
   0xa   : > { %3296 = vmatprep.subr.msk.mxu1 (!%p293_p3), %vm624_vm0, %v2943_v0  ;;  %3400 = vmatprep.subr.msk.mxu0 (!%p293_p3), %vm624_vm0, %v3014_v1  ;;  %p365_p5 = scmp.lt.s32.totalorder (!%p293_p3), %s3789_s22, 1  ;;  %p367_p6 = scmp.lt.s32.totalorder (!%p293_p3), %s3880_s8, 17  ;;  %v3888_v2 = vld [vmem:[%s4573_s2 + $0x14] sm:$0xf] (!%p293_p3)  ;;  %v3896_v3 = vld [vmem:[%s4573_s2] sm:$0xf] (!%p293_p3) }
   0xb   : > { %3297 = vmatpush3.msk.msra.mxu1 (!%p293_p3), %vm624_vm0, %v2943_v0  ;;  %3401 = vmatpush3.msk.msra.mxu0 (!%p293_p3), %vm624_vm0, %v3014_v1  ;;  %s3125_s11 = sadd.s32 (!%p293_p3), 8, %s3880_s8  ;;  %vm434_vm1 = vcmask (!%p293_p3), 31744   ;;  %v3973_v33 = vld [vmem:[%s4573_s2 + $0x18] sm:$0xf] (!%p293_p3)  ;;  %v3978_v34 = vld [vmem:[%s4573_s2 + $0x8] sm:$0xf] (!%p293_p3) }
   0xc   : > { %3426 = vmatprep.subr.msk.mxu0 (!%p293_p3), %vm624_vm0, %v3888_v2  ;;  %3322 = vmatprep.subr.msk.mxu1 (!%p293_p3), %vm624_vm0, %v3896_v3  ;;  %p387_p7 = scmp.lt.s32.totalorder (!%p293_p3), %s3125_s11, 17  ;;  %vm3804_vm2 = vmmov (!%p293_p3), 0   ;;  %vm2650_vm4 = vcmask (!%p293_p3), 64512   ;;  %p412_p11 = scmp.lt.s32.totalorder (!%p293_p3), %s3785_s21, 1 }
  0x10   : > { %s4589_s22 = smov (!%p365_p5, %s3789_s22), 1  ;;  %s4591_s11 = smov (!%p387_p7, %s3125_s11), 17 }
  0x11   : > { %s368_s14 = scalar_select %p367_p6, %s3880_s8, 17 }
  0x12   : > { %s3718_s15 = smul.u32 54, %s4589_s22 }
  0x13   : > { %s3717_s16 = smul.u32 3, %s368_s14 }
  0x14   : > { %s3719_s19 = smul.u32 3, %s4591_s11 }
  0x15   : > { %s371_s17 = sadd.s32 %s3718_s15, %s3717_s16 }
  0x16   : > { %s2935_s18 = sshll.u32 %s371_s17, 3  ;;  %s391_s30 = sadd.s32 %s3719_s19, %s3718_s15 }
  0x17   : > { %s3909_s29 = scalar_lea.vmem %s4571_s0, %s2935_s18  ;;  %s2938_s7 = sshll.u32 %s391_s30, 3 }
  0x18   : > { %v459_v4 = vld [vmem:[%s3909_s29 + $0x1] sm:$0xff]  ;;  %v461_v5 = vld [vmem:[%s3909_s29 + $0x19] sm:$0xff]  ;;  %v460_v6 = vld [vmem:[%s3909_s29 + $0x9] sm:$0xff]  ;;  %s3929_s11 = scalar_lea.vmem %s4572_s1, %s2938_s7  ;;  %s2940_s30 = sshll.u32 %s4589_s22, 5 }
  0x19   : > { %476 = vst.msk [vmem:[#allocation2 + $0xa0] sm:$0xff] %vm434_vm1, %v459_v4  ;;  %478 = vst.msk [vmem:[#allocation2 + $0xb0] sm:$0xff] %vm434_vm1, %v461_v5  ;;  %v462_v7 = vld [vmem:[%s3909_s29 + $0x21] sm:$0xff]  ;;  %v463_v8 = vld [vmem:[%s3909_s29 + $0x31] sm:$0xff]  ;;  %s4478_s15 = ssub.s32 16, %s3880_s8  ;;  %s2942_s19 = sshll.u32 %s4589_s22, 1 }
  0x1a   : > { %477 = vst.msk [vmem:[#allocation2 + $0xa8] sm:$0xff] %vm434_vm1, %v460_v6  ;;  %v464_v9 = vld [vmem:[%s3909_s29 + $0x39] sm:$0xff]  ;;  %479 = vst.msk [vmem:[#allocation2 + $0xb8] sm:$0xff] %vm434_vm1, %v462_v7  ;;  %v465_v10 = vld [vmem:[%s3909_s29 + $0x49] sm:$0xff]  ;;  %p2669_p9 = scmp.gt.s32.totalorder %s4478_s15, 0  ;;  %p3106_p10 = scmp.lt.s32.totalorder %s4478_s15, 8 }
  0x1b   : > { %480 = vst.msk [vmem:[#allocation2 + $0xc0] sm:$0xff] %vm434_vm1, %v463_v8  ;;  %481 = vst.msk [vmem:[#allocation2 + $0xc8] sm:$0xff] %vm434_vm1, %v464_v9  ;;  %v466_v11 = vld [vmem:[%s3909_s29 + $0x51] sm:$0xff]  ;;  %v467_v12 = vld [vmem:[%s3909_s29 + $0x61] sm:$0xff] }
  0x1c   : > { %482 = vst.msk [vmem:[#allocation2 + $0xd0] sm:$0xff] %vm434_vm1, %v465_v10  ;;  %483 = vst.msk [vmem:[#allocation2 + $0xd8] sm:$0xff] %vm434_vm1, %v466_v11  ;;  %v468_v13 = vld [vmem:[%s3909_s29 + $0x69] sm:$0xff]  ;;  %v469_v14 = vld [vmem:[%s3909_s29 + $0x79] sm:$0xff]  ;;  %s2670_s8 = scalar_select %p2669_p9, %s4478_s15, 0 }
  0x1d   : > { %484 = vst.msk [vmem:[#allocation2 + $0xe0] sm:$0xff] %vm434_vm1, %v467_v12  ;;  %v470_v15 = vld [vmem:[%s3909_s29 + $0x81] sm:$0xff]  ;;  %485 = vst.msk [vmem:[#allocation2 + $0xe8] sm:$0xff] %vm434_vm1, %v468_v13  ;;  %v471_v16 = vld [vmem:[%s3909_s29 + $0x91] sm:$0xff] }
  0x1e   : > { %486 = vst.msk [vmem:[#allocation2 + $0xf0] sm:$0xff] %vm434_vm1, %v469_v14  ;;  %487 = vst.msk [vmem:[#allocation2 + $0xf8] sm:$0xff] %vm434_vm1, %v470_v15  ;;  %v472_v17 = vld [vmem:[%s3909_s29 + $0x99] sm:$0xff]  ;;  %v473_v18 = vld [vmem:[%s3909_s29 + $0xa9] sm:$0xff]  ;;  %s4595_s8 = smov (!%p3106_p10, %s2670_s8), 8 }
  0x1f   : > { %488 = vst.msk [vmem:[#allocation2 + $0x100] sm:$0xff] %vm434_vm1, %v471_v16  ;;  %489 = vst.msk [vmem:[#allocation2 + $0x108] sm:$0xff] %vm434_vm1, %v472_v17  ;;  %v474_v19 = vld [vmem:[%s3909_s29 + $0xb1] sm:$0xff]  ;;  %v492_v20 = vld [vmem:[%s3929_s11 + $0x1] sm:$0xff]  ;;  %s3111_s16 = sshll.u32 %s4595_s8, 4 }
  0x20   : > { %490 = vst.msk [vmem:[#allocation2 + $0x110] sm:$0xff] %vm434_vm1, %v473_v18  ;;  %v493_v21 = vld [vmem:[%s3929_s11 + $0x9] sm:$0xff]  ;;  %491 = vst.msk [vmem:[#allocation2 + $0x118] sm:$0xff] %vm434_vm1, %v474_v19  ;;  %v418_v22 = vld [vmem:[%s3909_s29] sm:$0xff] }
  0x21   : > { %496 = vst.msk [vmem:[#allocation2 + $0x120] sm:$0xff] %vm434_vm1, %v492_v20  ;;  %497 = vst.msk [vmem:[#allocation2 + $0x128] sm:$0xff] %vm434_vm1, %v493_v21  ;;  %v502_v23 = vld [vmem:[%s3909_s29 + $0x1a] sm:$0xff]  ;;  %v419_v24 = vld [vmem:[%s3909_s29 + $0x8] sm:$0xff] }
  0x22   : > { %435 = vst.msk [vmem:[#allocation2] sm:$0xff] %vm434_vm1, %v418_v22  ;;  %519 = vst.msk [vmem:[#allocation2 + $0x150] sm:$0xff] %vm434_vm1, %v502_v23  ;;  %v503_v25 = vld [vmem:[%s3909_s29 + $0x22] sm:$0xff]  ;;  %v420_v26 = vld [vmem:[%s3909_s29 + $0x18] sm:$0xff] }
  0x23   : > { %436 = vst.msk [vmem:[#allocation2 + $0x8] sm:$0xff] %vm434_vm1, %v419_v24  ;;  %v504_v27 = vld [vmem:[%s3909_s29 + $0x32] sm:$0xff]  ;;  %v558_v28 = vld [vmem:[#allocation2 + $0xa0] sm:$0xff]  ;;  %v559_v30 = vld [vmem:[#allocation2 + $0xa8] sm:$0xff] }
  0x24   : > { %v1429_v29 = vld [vmem:[#allocation2 + $0xb0] sm:$0xff]  ;;  %520 = vst.msk [vmem:[#allocation2 + $0x158] sm:$0xff] %vm434_vm1, %v503_v25  ;;  %437 = vst.msk [vmem:[#allocation2 + $0x10] sm:$0xff] %vm434_vm1, %v420_v26  ;;  %3298 = vmatprep.mubr.msk.f32.mxu1 %vm434_vm1, %v558_v28  ;;  %v1430_v31 = vld [vmem:[#allocation2 + $0xb8] sm:$0xff] }
  0x25   : > { %521 = vst.msk [vmem:[#allocation2 + $0x160] sm:$0xff] %vm434_vm1, %v504_v27  ;;  %3402 = vmatprep.mubr.msk.f32.mxu0 %vm434_vm1, %v1429_v29  ;;  %v3966_v32 = vld [vmem:[#allocation2 + $0xc0] sm:$0xff]  ;;  %3299 = vmatmul.mubr.msk.f32.vlgmr.msra.gmra.mrb[0].mxu1 %vm434_vm1, %v559_v30  ;;  %v3983_v35 = vld [vmem:[#allocation2 + $0xc8] sm:$0xff]  ;;  %v3987_v36 = vld [vmem:[#allocation2 + $0xd0] sm:$0xff] }
  0x26   : > { %3403 = vmatmul.mubr.msk.f32.vlgmr.msra.gmra.mrb[0].mxu0 %vm434_vm1, %v1430_v31  ;;  %3301 = vmatprep.mubr.msk.f32.mxu1 %vm434_vm1, %v1429_v29  ;;  %v4002_v37 = vld [vmem:[#allocation2 + $0xd8] sm:$0xff]  ;;  %v4004_v38 = vld [vmem:[#allocation2 + $0xe0] sm:$0xff]  ;;  %v422_v41 = vld [vmem:[%s3909_s29 + $0x30] sm:$0xff] }
  0x27   : > { %3427 = vmatpush3.msk.msra.mxu0 %vm624_vm0, %v3888_v2  ;;  %3405 = vmatprep.mubr.msk.f32.mxu0 %vm434_vm1, %v3966_v32  ;;  %v421_v39 = vld [vmem:[%s3909_s29 + $0x20] sm:$0xff]  ;;  %v4009_v42 = vld [vmem:[#allocation2 + $0xe8] sm:$0xff]  ;;  %439 = vst.msk [vmem:[#allocation2 + $0x20] sm:$0xff] %vm434_vm1, %v422_v41  ;;  %v423_v44 = vld [vmem:[%s3909_s29 + $0x38] sm:$0xff] }
  0x28   : > { %3323 = vmatpush3.msk.msra.mxu1 %vm624_vm0, %v3896_v3  ;;  %3452 = vmatprep.subr.msk.mxu0 %vm624_vm0, %v3973_v33  ;;  %v505_v40 = vld [vmem:[%s3909_s29 + $0x3a] sm:$0xff]  ;;  %438 = vst.msk [vmem:[#allocation2 + $0x18] sm:$0xff] %vm434_vm1, %v421_v39  ;;  %v506_v43 = vld [vmem:[%s3909_s29 + $0x4a] sm:$0xff]  ;;  %v507_v45 = vld [vmem:[%s3909_s29 + $0x52] sm:$0xff] }
  0x29   : > { %3348 = vmatprep.subr.msk.mxu1 %vm624_vm0, %v3978_v34  ;;  %3302 = vmatmul.mubr.msk.f32.gmra.mrb[2].mxu1 %vm434_vm1, %v1430_v31  ;;  %522 = vst.msk [vmem:[#allocation2 + $0x168] sm:$0xff] %vm434_vm1, %v505_v40  ;;  %v4021_v46 = vld [vmem:[#allocation2 + $0xf0] sm:$0xff]  ;;  %523 = vst.msk [vmem:[#allocation2 + $0x170] sm:$0xff] %vm434_vm1, %v506_v43  ;;  %v424_v47 = vld [vmem:[%s3909_s29 + $0x48] sm:$0xff] }
  0x2a   : > { %3406 = vmatmul.mubr.msk.f32.gmra.mrb[2].mxu0 %vm434_vm1, %v3983_v35  ;;  %3304 = vmatprep.mubr.msk.f32.mxu1 %vm434_vm1, %v3966_v32  ;;  %440 = vst.msk [vmem:[#allocation2 + $0x28] sm:$0xff] %vm434_vm1, %v423_v44  ;;  %524 = vst.msk [vmem:[#allocation2 + $0x178] sm:$0xff] %vm434_vm1, %v507_v45  ;;  %v508_v48 = vld [vmem:[%s3909_s29 + $0x62] sm:$0xff]  ;;  %v425_v49 = vld [vmem:[%s3909_s29 + $0x50] sm:$0xff] }
  0x2b   : > { %3408 = vmatprep.mubr.msk.f32.mxu0 %vm434_vm1, %v3987_v36  ;;  %441 = vst.msk [vmem:[#allocation2 + $0x30] sm:$0xff] %vm434_vm1, %v424_v47  ;;  %525 = vst.msk [vmem:[#allocation2 + $0x180] sm:$0xff] %vm434_vm1, %v508_v48  ;;  %v509_v50 = vld [vmem:[%s3909_s29 + $0x6a] sm:$0xff]  ;;  %v426_v51 = vld [vmem:[%s3909_s29 + $0x60] sm:$0xff] }
  0x2c   : > { %442 = vst.msk [vmem:[#allocation2 + $0x38] sm:$0xff] %vm434_vm1, %v425_v49  ;;  %v510_v52 = vld [vmem:[%s3909_s29 + $0x7a] sm:$0xff]  ;;  %526 = vst.msk [vmem:[#allocation2 + $0x188] sm:$0xff] %vm434_vm1, %v509_v50  ;;  %v427_v53 = vld [vmem:[%s3909_s29 + $0x68] sm:$0xff] }
  0x2d   : > { %3305 = vmatmul.mubr.msk.f32.gmra.mrb[4].mxu1 %vm434_vm1, %v3983_v35  ;;  %443 = vst.msk [vmem:[#allocation2 + $0x40] sm:$0xff] %vm434_vm1, %v426_v51  ;;  %527 = vst.msk [vmem:[#allocation2 + $0x190] sm:$0xff] %vm434_vm1, %v510_v52  ;;  %v511_v54 = vld [vmem:[%s3909_s29 + $0x82] sm:$0xff]  ;;  %v428_v55 = vld [vmem:[%s3909_s29 + $0x78] sm:$0xff] }
  0x2e   : > { %3409 = vmatmul.mubr.msk.f32.gmra.mrb[4].mxu0 %vm434_vm1, %v4002_v37  ;;  %3307 = vmatprep.mubr.msk.f32.mxu1 %vm434_vm1, %v3987_v36  ;;  %v4045_v56 = vld [vmem:[#allocation2 + $0xf8] sm:$0xff]  ;;  %444 = vst.msk [vmem:[#allocation2 + $0x48] sm:$0xff] %vm434_vm1, %v427_v53  ;;  %528 = vst.msk [vmem:[#allocation2 + $0x198] sm:$0xff] %vm434_vm1, %v511_v54  ;;  %v429_v58 = vld [vmem:[%s3909_s29 + $0x80] sm:$0xff] }
  0x2f   : > { %3411 = vmatprep.mubr.msk.f32.mxu0 %vm434_vm1, %v4004_v38  ;;  %445 = vst.msk [vmem:[#allocation2 + $0x50] sm:$0xff] %vm434_vm1, %v428_v55  ;;  %v512_v57 = vld [vmem:[%s3909_s29 + $0x92] sm:$0xff]  ;;  %v513_v59 = vld [vmem:[%s3909_s29 + $0x9a] sm:$0xff]  ;;  %446 = vst.msk [vmem:[#allocation2 + $0x58] sm:$0xff] %vm434_vm1, %v429_v58 }
  0x30   : > { %529 = vst.msk [vmem:[#allocation2 + $0x1a0] sm:$0xff] %vm434_vm1, %v512_v57  ;;  %530 = vst.msk [vmem:[#allocation2 + $0x1a8] sm:$0xff] %vm434_vm1, %v513_v59  ;;  %v430_v60 = vld [vmem:[%s3909_s29 + $0x90] sm:$0xff]  ;;  %v431_v62 = vld [vmem:[%s3909_s29 + $0x98] sm:$0xff] }
  0x31   : > { %3308 = vmatmul.mubr.msk.f32.gmra.mrb[6].mxu1 %vm434_vm1, %v4002_v37  ;;  %v514_v61 = vld [vmem:[%s3909_s29 + $0xaa] sm:$0xff]  ;;  %447 = vst.msk [vmem:[#allocation2 + $0x60] sm:$0xff] %vm434_vm1, %v430_v60  ;;  %448 = vst.msk [vmem:[#allocation2 + $0x68] sm:$0xff] %vm434_vm1, %v431_v62  ;;  %v515_v63 = vld [vmem:[%s3909_s29 + $0xb2] sm:$0xff] }
  0x32   : > { %3412 = vmatmul.mubr.msk.f32.gmra.mrb[6].mxu0 %vm434_vm1, %v4009_v42  ;;  %3310 = vmatprep.mubr.msk.f32.mxu1 %vm434_vm1, %v4004_v38  ;;  %531 = vst.msk [vmem:[#allocation2 + $0x1b0] sm:$0xff] %vm434_vm1, %v514_v61  ;;  %v432_v0 = vld [vmem:[%s3909_s29 + $0xa8] sm:$0xff]  ;;  %v4073_v2 = vld [vmem:[#allocation2 + $0x100] sm:$0xff]  ;;  %532 = vst.msk [vmem:[#allocation2 + $0x1b8] sm:$0xff] %vm434_vm1, %v515_v63 }
  0x33   : > { %3414 = vmatprep.mubr.msk.f32.mxu0 %vm434_vm1, %v4021_v46  ;;  %v533_v1 = vld [vmem:[%s3929_s11 + $0x2] sm:$0xff]  ;;  %449 = vst.msk [vmem:[#allocation2 + $0x70] sm:$0xff] %vm434_vm1, %v432_v0  ;;  %v4088_v4 = vld [vmem:[#allocation2 + $0x110] sm:$0xff]  ;;  %v4098_v5 = vld [vmem:[#allocation2 + $0x118] sm:$0xff] }
  0x34   : > { %537 = vst.msk [vmem:[#allocation2 + $0x1c0] sm:$0xff] %vm434_vm1, %v533_v1  ;;  %v4086_v3 = vld [vmem:[#allocation2 + $0x108] sm:$0xff]  ;;  %v4100_v6 = vld [vmem:[#allocation2 + $0x120] sm:$0xff]  ;;  %v433_v7 = vld [vmem:[%s3909_s29 + $0xb0] sm:$0xff] }
  0x35   : > { %3311 = vmatmul.mubr.msk.f32.gmra.mrb[8].mxu1 %vm434_vm1, %v4009_v42  ;;  %v534_v8 = vld [vmem:[%s3929_s11 + $0xa] sm:$0xff]  ;;  %v500_v9 = vld [vmem:[%s3909_s29 + $0x2] sm:$0xff]  ;;  %450 = vst.msk [vmem:[#allocation2 + $0x78] sm:$0xff] %vm434_vm1, %v433_v7  ;;  %v453_v14 = vld [vmem:[%s3929_s11 + $0x18] sm:$0xff] }
  0x36   : > { %3415 = vmatmul.mubr.msk.f32.gmra.mrb[8].mxu0 %vm434_vm1, %v4045_v56  ;;  %3313 = vmatprep.mubr.msk.f32.mxu1 %vm434_vm1, %v4021_v46  ;;  %v4105_v10 = vld [vmem:[#allocation2 + $0x128] sm:$0xff]  ;;  %538 = vst.msk [vmem:[#allocation2 + $0x1c8] sm:$0xff] %vm434_vm1, %v534_v8  ;;  %517 = vst.msk [vmem:[#allocation2 + $0x140] sm:$0xff] %vm434_vm1, %v500_v9  ;;  %v451_v12 = vld [vmem:[%s3929_s11] sm:$0xff] }
  0x37   : > { %3417 = vmatprep.mubr.msk.f32.mxu0 %vm434_vm1, %v4073_v2  ;;  %v501_v11 = vld [vmem:[%s3909_s29 + $0xa] sm:$0xff]  ;;  %455 = vst.msk [vmem:[#allocation2 + $0x80] sm:$0xff] %vm434_vm1, %v451_v12  ;;  %v454_v15 = vld [vmem:[%s3929_s11 + $0x20] sm:$0xff]  ;;  %457 = vst.msk [vmem:[#allocation2 + $0x90] sm:$0xff] %vm434_vm1, %v453_v14  ;;  %s2939_s29 = sshll.u32 %s3785_s21, 4  ;;  %s4597_s21 = smov (!%p412_p11, %s3785_s21), 1 }
  0x38   : > { %v452_v13 = vld [vmem:[%s3929_s11 + $0x8] sm:$0xff]  ;;  %518 = vst.msk [vmem:[#allocation2 + $0x148] sm:$0xff] %vm434_vm1, %v501_v11  ;;  %v494_v16 = vld [vmem:[%s3929_s11 + $0x19] sm:$0xff]  ;;  %458 = vst.msk [vmem:[#allocation2 + $0x98] sm:$0xff] %vm434_vm1, %v454_v15  ;;  %p402_p8 = scmp.lt.s32.totalorder %s2939_s29, 31  ;;  %s415_s20 = sadd.s32 %s2942_s19, %s4597_s21 }
  0x39   : > { %3314 = vmatmul.mubr.msk.f32.gmra.mrb[10].mxu1 %vm434_vm1, %v4045_v56  ;;  %456 = vst.msk [vmem:[#allocation2 + $0x88] sm:$0xff] %vm434_vm1, %v452_v13  ;;  %498 = vst.msk [vmem:[#allocation2 + $0x130] sm:$0xff] %vm434_vm1, %v494_v16  ;;  %v495_v17 = vld [vmem:[%s3929_s11 + $0x21] sm:$0xff]  ;;  %v4133_v21 = vld [vmem:[#allocation2 + $0x150] sm:$0xff] }
  0x3a   : > { %3418 = vmatmul.mubr.msk.f32.gmra.mrb[10].mxu0 %vm434_vm1, %v4086_v3  ;;  %3316 = vmatprep.mubr.msk.f32.mxu1 %vm434_vm1, %v4073_v2  ;;  %v535_v18 = vld [vmem:[%s3929_s11 + $0x1a] sm:$0xff]  ;;  %v536_v19 = vld [vmem:[%s3929_s11 + $0x22] sm:$0xff]  ;;  %499 = vst.msk [vmem:[#allocation2 + $0x138] sm:$0xff] %vm434_vm1, %v495_v17  ;;  %v4147_v24 = vld [vmem:[#allocation2 + $0x10] sm:$0xff]  ;;  %s4593_s29 = smov (!%p402_p8, %s2939_s29), 31 }
  0x3b   : > { %3420 = vmatprep.mubr.msk.f32.mxu0 %vm434_vm1, %v4088_v4  ;;  %v541_v20 = vld [vmem:[#allocation2] sm:$0xff]  ;;  %539 = vst.msk [vmem:[#allocation2 + $0x1d0] sm:$0xff] %vm434_vm1, %v535_v18  ;;  %540 = vst.msk [vmem:[#allocation2 + $0x1d8] sm:$0xff] %vm434_vm1, %v536_v19  ;;  %v542_v22 = vld [vmem:[#allocation2 + $0x8] sm:$0xff]  ;;  %s405_s7 = sadd.s32 %s2940_s30, %s4593_s29  ;;  %s416_s30 = scalar_lea.vmem %s4577_s6, %s415_s20 }
  0x3c   : > { %v4145_v23 = vld [vmem:[#allocation2 + $0x158] sm:$0xff]  ;;  %v4149_v25 = vld [vmem:[#allocation2 + $0x160] sm:$0xff]  ;;  %v4162_v27 = vld [vmem:[%s4573_s2 + $0xc] sm:$0xf]  ;;  %s2941_s11 = sshll.u32 %s405_s7, 3 }
  0x3d   : > { %3317 = vmatmul.mubr.msk.f32.gmra.mrb[12].mxu1 %vm434_vm1, %v4086_v3  ;;  %v4157_v26 = vld [vmem:[%s4573_s2 + $0x1c] sm:$0xf]  ;;  %v4170_v29 = vld [vmem:[#allocation2 + $0x168] sm:$0xff]  ;;  %v4174_v30 = vld [vmem:[#allocation2 + $0x20] sm:$0xff]  ;;  %s4469_s14 = scalar_lea.vmem %s4576_s5, %s2941_s11 }
  0x3e   : > { %3421 = vmatmul.mubr.msk.f32.gmra.mrb[12].mxu0 %vm434_vm1, %v4098_v5  ;;  %3319 = vmatprep.mubr.msk.f32.mxu1 %vm434_vm1, %v4088_v4  ;;  %v4168_v28 = vld [vmem:[#allocation2 + $0x18] sm:$0xff]  ;;  %v4176_v31 = vld [vmem:[#allocation2 + $0x170] sm:$0xff]  ;;  %v4198_v40 = vld [vmem:[#allocation2 + $0x180] sm:$0xff] }
  0x3f   : > { %3423 = vmatprep.mubr.msk.f32.mxu0 %vm434_vm1, %v4100_v6  ;;  %v4196_v39 = vld [vmem:[#allocation2 + $0x30] sm:$0xff]  ;;  %v4208_v41 = vld [vmem:[#allocation2 + $0x38] sm:$0xff]  ;;  %v4210_v43 = vld [vmem:[#allocation2 + $0x188] sm:$0xff] }
  0x40   : > { %v4212_v44 = vld [vmem:[#allocation2 + $0x40] sm:$0xff]  ;;  %v4214_v45 = vld [vmem:[#allocation2 + $0x190] sm:$0xff]  ;;  %v4224_v47 = vld [vmem:[#allocation2 + $0x48] sm:$0xff] }
  0x41   : > { %3320 = vmatmul.mubr.msk.f32.gmra.mrb[14].mxu1 %vm434_vm1, %v4098_v5  ;;  %v4226_v48 = vld [vmem:[#allocation2 + $0x198] sm:$0xff]  ;;  %v4228_v49 = vld [vmem:[#allocation2 + $0x50] sm:$0xff]  ;;  %v4230_v50 = vld [vmem:[#allocation2 + $0x1a0] sm:$0xff] }
  0x42   : > { %3424 = vmatmul.mubr.msk.f32.gmra.mrb[14].mxu0 %vm434_vm1, %v4105_v10  ;;  %3324 = vmatprep.mubr.msk.f32.mxu1 %vm434_vm1, %v541_v20  ;;  %v4240_v51 = vld [vmem:[#allocation2 + $0x58] sm:$0xff]  ;;  %v4242_v52 = vld [vmem:[#allocation2 + $0x1a8] sm:$0xff]  ;;  %v4244_v53 = vld [vmem:[#allocation2 + $0x60] sm:$0xff] }
  0x43   : > { %3428 = vmatprep.mubr.msk.f32.mxu0 %vm434_vm1, %v4133_v21  ;;  %v4246_v54 = vld [vmem:[#allocation2 + $0x1b0] sm:$0xff]  ;;  %v4256_v55 = vld [vmem:[#allocation2 + $0x68] sm:$0xff]  ;;  %v4258_v57 = vld [vmem:[#allocation2 + $0x1b8] sm:$0xff] }
  0x44   : > { %v4260_v58 = vld [vmem:[#allocation2 + $0x70] sm:$0xff]  ;;  %v4262_v59 = vld [vmem:[#allocation2 + $0x1c0] sm:$0xff]  ;;  %v4272_v60 = vld [vmem:[#allocation2 + $0x78] sm:$0xff] }
  0x45   : > { %3325 = vmatmul.mubr.msk.f32.vlgmr.msra.gmra.mrb[0].mxu1 %vm434_vm1, %v542_v22  ;;  %v4274_v61 = vld [vmem:[#allocation2 + $0x1c8] sm:$0xff]  ;;  %v969_v62 = vld [vmem:[#allocation2 + $0x140] sm:$0xff]  ;;  %v1903_v8 = vld [vmem:[#allocation2 + $0x90] sm:$0xff] }
  0x46   : > { %3429 = vmatmul.mubr.msk.f32.vlgmr.msra.gmra.mrb[0].mxu0 %vm434_vm1, %v4145_v23  ;;  %3327 = vmatprep.mubr.msk.f32.mxu1 %vm434_vm1, %v4147_v24  ;;  %v970_v63 = vld [vmem:[#allocation2 + $0x148] sm:$0xff]  ;;  %v3086_v0 = vld [vmem:[%s4573_s2 + $0x20] sm:$0xf]  ;;  %v1904_v9 = vld [vmem:[#allocation2 + $0x98] sm:$0xff] }
  0x47   : > { %3453 = vmatpush3.msk.msra.mxu0 %vm624_vm0, %v3973_v33  ;;  %3431 = vmatprep.mubr.msk.f32.mxu0 %vm434_vm1, %v4149_v25  ;;  %v4192_v33 = vld [vmem:[#allocation2 + $0x28] sm:$0xff]  ;;  %v1901_v1 = vld [vmem:[#allocation2 + $0x80] sm:$0xff] }
  0x48   : > { %3349 = vmatpush3.msk.msra.mxu1 %vm624_vm0, %v3978_v34  ;;  %3478 = vmatprep.subr.msk.mxu0 %vm624_vm0, %v4157_v26  ;;  %v4194_v34 = vld [vmem:[#allocation2 + $0x178] sm:$0xff]  ;;  %v1902_v7 = vld [vmem:[#allocation2 + $0x88] sm:$0xff]  ;;  %v4462_v20 = vld [vmem:[%s4574_s3] ss:$0 sm:$0xff] }
  0x49   : > { %3374 = vmatprep.subr.msk.mxu1 %vm624_vm0, %v4162_v27  ;;  %3328 = vmatmul.mubr.msk.f32.gmra.mrb[2].mxu1 %vm434_vm1, %v4168_v28 }
  0x4a   : > { %3432 = vmatmul.mubr.msk.f32.gmra.mrb[2].mxu0 %vm434_vm1, %v4170_v29  ;;  %3330 = vmatprep.mubr.msk.f32.mxu1 %vm434_vm1, %v4174_v30 }
  0x4b   : > { %3434 = vmatprep.mubr.msk.f32.mxu0 %vm434_vm1, %v4176_v31 }
  0x4d   : > { %3331 = vmatmul.mubr.msk.f32.gmra.mrb[4].mxu1 %vm434_vm1, %v4192_v33 }
  0x4e   : > { %3435 = vmatmul.mubr.msk.f32.gmra.mrb[4].mxu0 %vm434_vm1, %v4194_v34  ;;  %3333 = vmatprep.mubr.msk.f32.mxu1 %vm434_vm1, %v4196_v39 }
  0x4f   : > { %3437 = vmatprep.mubr.msk.f32.mxu0 %vm434_vm1, %v4198_v40 }
  0x51   : > { %3334 = vmatmul.mubr.msk.f32.gmra.mrb[6].mxu1 %vm434_vm1, %v4208_v41 }
  0x52   : > { %3438 = vmatmul.mubr.msk.f32.gmra.mrb[6].mxu0 %vm434_vm1, %v4210_v43  ;;  %3336 = vmatprep.mubr.msk.f32.mxu1 %vm434_vm1, %v4212_v44 }
  0x53   : > { %3440 = vmatprep.mubr.msk.f32.mxu0 %vm434_vm1, %v4214_v45 }
  0x55   : > { %3337 = vmatmul.mubr.msk.f32.gmra.mrb[8].mxu1 %vm434_vm1, %v4224_v47 }
  0x56   : > { %3441 = vmatmul.mubr.msk.f32.gmra.mrb[8].mxu0 %vm434_vm1, %v4226_v48  ;;  %3339 = vmatprep.mubr.msk.f32.mxu1 %vm434_vm1, %v4228_v49 }
  0x57   : > { %3443 = vmatprep.mubr.msk.f32.mxu0 %vm434_vm1, %v4230_v50 }
  0x59   : > { %3340 = vmatmul.mubr.msk.f32.gmra.mrb[10].mxu1 %vm434_vm1, %v4240_v51 }
  0x5a   : > { %3444 = vmatmul.mubr.msk.f32.gmra.mrb[10].mxu0 %vm434_vm1, %v4242_v52  ;;  %3342 = vmatprep.mubr.msk.f32.mxu1 %vm434_vm1, %v4244_v53 }
  0x5b   : > { %3446 = vmatprep.mubr.msk.f32.mxu0 %vm434_vm1, %v4246_v54 }
  0x5d   : > { %3343 = vmatmul.mubr.msk.f32.gmra.mrb[12].mxu1 %vm434_vm1, %v4256_v55 }
  0x5e   : > { %3447 = vmatmul.mubr.msk.f32.gmra.mrb[12].mxu0 %vm434_vm1, %v4258_v57  ;;  %3345 = vmatprep.mubr.msk.f32.mxu1 %vm434_vm1, %v4260_v58 }
  0x5f   : > { %3449 = vmatprep.mubr.msk.f32.mxu0 %vm434_vm1, %v4262_v59 }
  0x61   : > { %3346 = vmatmul.mubr.msk.f32.gmra.mrb[14].mxu1 %vm434_vm1, %v4272_v60 }
  0x62   : > { %3450 = vmatmul.mubr.msk.f32.gmra.mrb[14].mxu0 %vm434_vm1, %v4274_v61  ;;  %3350 = vmatprep.mubr.msk.f32.mxu1 %vm434_vm1, %v969_v62 }
  0x63   : > { %3454 = vmatprep.mubr.msk.f32.mxu0 %vm434_vm1, %v4174_v30 }
  0x65   : > { %3351 = vmatmul.mubr.msk.f32.vlgmr.msra.gmra.mrb[0].mxu1 %vm434_vm1, %v970_v63 }
  0x66   : > { %3455 = vmatmul.mubr.msk.f32.vlgmr.msra.gmra.mrb[0].mxu0 %vm434_vm1, %v4192_v33  ;;  %3353 = vmatprep.mubr.msk.f32.mxu1 %vm434_vm1, %v4133_v21 }
  0x67   : > { %3479 = vmatpush3.msk.msra.mxu0 %vm624_vm0, %v4157_v26  ;;  %3457 = vmatprep.mubr.msk.f32.mxu0 %vm434_vm1, %v4196_v39 }
  0x68   : > { %3375 = vmatpush3.msk.msra.mxu1 %vm624_vm0, %v4162_v27  ;;  %3504 = vmatprep.subr.msk.mxu0 %vm624_vm0, %v3086_v0 }
  0x69   : > { %3354 = vmatmul.mubr.msk.f32.gmra.mrb[2].mxu1 %vm434_vm1, %v4145_v23 }
  0x6a   : > { %3458 = vmatmul.mubr.msk.f32.gmra.mrb[2].mxu0 %vm434_vm1, %v4208_v41  ;;  %3356 = vmatprep.mubr.msk.f32.mxu1 %vm434_vm1, %v4149_v25 }
  0x6b   : > { %3460 = vmatprep.mubr.msk.f32.mxu0 %vm434_vm1, %v4212_v44 }
  0x6d   : > { %3357 = vmatmul.mubr.msk.f32.gmra.mrb[4].mxu1 %vm434_vm1, %v4170_v29 }
  0x6e   : > { %3461 = vmatmul.mubr.msk.f32.gmra.mrb[4].mxu0 %vm434_vm1, %v4224_v47  ;;  %3359 = vmatprep.mubr.msk.f32.mxu1 %vm434_vm1, %v4176_v31 }
  0x6f   : > { %3463 = vmatprep.mubr.msk.f32.mxu0 %vm434_vm1, %v4228_v49 }
  0x71   : > { %3360 = vmatmul.mubr.msk.f32.gmra.mrb[6].mxu1 %vm434_vm1, %v4194_v34 }
  0x72   : > { %3464 = vmatmul.mubr.msk.f32.gmra.mrb[6].mxu0 %vm434_vm1, %v4240_v51  ;;  %3362 = vmatprep.mubr.msk.f32.mxu1 %vm434_vm1, %v4198_v40 }
  0x73   : > { %3466 = vmatprep.mubr.msk.f32.mxu0 %vm434_vm1, %v4244_v53 }
  0x75   : > { %3363 = vmatmul.mubr.msk.f32.gmra.mrb[8].mxu1 %vm434_vm1, %v4210_v43 }
  0x76   : > { %3467 = vmatmul.mubr.msk.f32.gmra.mrb[8].mxu0 %vm434_vm1, %v4256_v55  ;;  %3365 = vmatprep.mubr.msk.f32.mxu1 %vm434_vm1, %v4214_v45 }
  0x77   : > { %3469 = vmatprep.mubr.msk.f32.mxu0 %vm434_vm1, %v4260_v58 }
  0x79   : > { %3366 = vmatmul.mubr.msk.f32.gmra.mrb[10].mxu1 %vm434_vm1, %v4226_v48 }
  0x7a   : > { %3470 = vmatmul.mubr.msk.f32.gmra.mrb[10].mxu0 %vm434_vm1, %v4272_v60  ;;  %3368 = vmatprep.mubr.msk.f32.mxu1 %vm434_vm1, %v4230_v50 }
  0x7b   : > { %3472 = vmatprep.mubr.msk.f32.mxu0 %vm434_vm1, %v1901_v1 }
  0x7d   : > { %3369 = vmatmul.mubr.msk.f32.gmra.mrb[12].mxu1 %vm434_vm1, %v4242_v52 }
  0x7e   : > { %3473 = vmatmul.mubr.msk.f32.gmra.mrb[12].mxu0 %vm434_vm1, %v1902_v7  ;;  %3371 = vmatprep.mubr.msk.f32.mxu1 %vm434_vm1, %v4246_v54 }
  0x7f   : > { %3475 = vmatprep.mubr.msk.f32.mxu0 %vm434_vm1, %v1903_v8 }
  0x81   : > { %3372 = vmatmul.mubr.msk.f32.gmra.mrb[14].mxu1 %vm434_vm1, %v4258_v57 }
  0x82   : > { %3476 = vmatmul.mubr.msk.f32.gmra.mrb[14].mxu0 %vm434_vm1, %v1904_v9  ;;  %3376 = vmatprep.mubr.msk.f32.mxu1 %vm434_vm1, %v4147_v24 }
  0x83   : > { %3480 = vmatprep.mubr.msk.f32.mxu0 %vm434_vm1, %v3966_v32  ;;  %v2133_v32 = vld [vmem:[#allocation2 + $0x130] sm:$0xff] }
  0x85   : > { %3377 = vmatmul.mubr.msk.f32.vlgmr.msra.gmra.mrb[0].mxu1 %vm434_vm1, %v4168_v28 }
  0x86   : > { %3481 = vmatmul.mubr.msk.f32.vlgmr.msra.gmra.mrb[0].mxu0 %vm434_vm1, %v3983_v35  ;;  %3379 = vmatprep.mubr.msk.f32.mxu1 %vm434_vm1, %v4174_v30  ;;  %v2134_v35 = vld [vmem:[#allocation2 + $0x138] sm:$0xff] }
  0x87   : > { %3505 = vmatpush3.msk.msra.mxu0 %vm624_vm0, %v3086_v0  ;;  %3483 = vmatprep.mubr.msk.f32.mxu0 %vm434_vm1, %v3987_v36  ;;  %v2363_v36 = vld [vmem:[#allocation2 + $0x1d0] sm:$0xff] }
  0x89   : > { %3380 = vmatmul.mubr.msk.f32.gmra.mrb[2].mxu1 %vm434_vm1, %v4192_v33 }
  0x8a   : > { %3484 = vmatmul.mubr.msk.f32.gmra.mrb[2].mxu0 %vm434_vm1, %v4002_v37  ;;  %3382 = vmatprep.mubr.msk.f32.mxu1 %vm434_vm1, %v4196_v39  ;;  %v2364_v37 = vld [vmem:[#allocation2 + $0x1d8] sm:$0xff] }
  0x8b   : > { %3486 = vmatprep.mubr.msk.f32.mxu0 %vm434_vm1, %v4004_v38  ;;  %v3803_v38 = vmov 0.0|0.0  }
  0x8c   : > { %3565 = vmatprep.subr.bf16.mxu1 %v3803_v38 }
  0x8d   : > { %3383 = vmatmul.mubr.msk.f32.gmra.mrb[4].mxu1 %vm434_vm1, %v4208_v41 }
  0x8e   : > { %3487 = vmatmul.mubr.msk.f32.gmra.mrb[4].mxu0 %vm434_vm1, %v4009_v42  ;;  %3385 = vmatprep.mubr.msk.f32.mxu1 %vm434_vm1, %v4212_v44  ;;  %v3805_v42 = vmov 0.0  }
  0x8f   : > { %3489 = vmatprep.mubr.msk.f32.mxu0 %vm434_vm1, %v4021_v46 }
  0x91   : > { %3386 = vmatmul.mubr.msk.f32.gmra.mrb[6].mxu1 %vm434_vm1, %v4224_v47 }
  0x92   : > { %3490 = vmatmul.mubr.msk.f32.gmra.mrb[6].mxu0 %vm434_vm1, %v4045_v56  ;;  %3388 = vmatprep.mubr.msk.f32.mxu1 %vm434_vm1, %v4228_v49 }
  0x93   : > { %3492 = vmatprep.mubr.msk.f32.mxu0 %vm434_vm1, %v4073_v2 }
  0x95   : > { %3389 = vmatmul.mubr.msk.f32.gmra.mrb[8].mxu1 %vm434_vm1, %v4240_v51 }
  0x96   : > { %3493 = vmatmul.mubr.msk.f32.gmra.mrb[8].mxu0 %vm434_vm1, %v4086_v3  ;;  %3391 = vmatprep.mubr.msk.f32.mxu1 %vm434_vm1, %v4244_v53 }
  0x97   : > { %3495 = vmatprep.mubr.msk.f32.mxu0 %vm434_vm1, %v4088_v4 }
  0x99   : > { %3392 = vmatmul.mubr.msk.f32.gmra.mrb[10].mxu1 %vm434_vm1, %v4256_v55 }
  0x9a   : > { %3496 = vmatmul.mubr.msk.f32.gmra.mrb[10].mxu0 %vm434_vm1, %v4098_v5  ;;  %3394 = vmatprep.mubr.msk.f32.mxu1 %vm434_vm1, %v4260_v58 }
  0x9b   : > { %3498 = vmatprep.mubr.msk.f32.mxu0 %vm434_vm1, %v4100_v6 }
  0x9d   : > { %3395 = vmatmul.mubr.msk.f32.gmra.mrb[12].mxu1 %vm434_vm1, %v4272_v60 }
  0x9e   : > { %3499 = vmatmul.mubr.msk.f32.gmra.mrb[12].mxu0 %vm434_vm1, %v4105_v10  ;;  %3397 = vmatprep.mubr.msk.f32.mxu1 %vm434_vm1, %v1901_v1 }
  0x9f   : > { %3501 = vmatprep.mubr.msk.f32.mxu0 %vm434_vm1, %v2133_v32 }
  0xa1   : > { %3398 = vmatmul.mubr.msk.f32.gmra.mrb[14].mxu1 %vm434_vm1, %v1902_v7 }
  0xa2   : > { %3502 = vmatmul.mubr.msk.f32.gmra.mrb[14].mxu0 %vm434_vm1, %v2134_v35  ;;  %3562 = vmatprep.mubr.msk.f32.mxu1 %vm3804_vm2, %v3805_v42 }
  0xa3   : > { %3506 = vmatprep.mubr.msk.f32.mxu0 %vm434_vm1, %v4149_v25 }
  0xa6   : > { %3507 = vmatmul.mubr.msk.f32.vlgmr.msra.gmra.mrb[0].mxu0 %vm434_vm1, %v4170_v29 }
  0xa7   : > { %3509 = vmatprep.mubr.msk.f32.mxu0 %vm434_vm1, %v4176_v31 }
  0xaa   : > { %3510 = vmatmul.mubr.msk.f32.gmra.mrb[2].mxu0 %vm434_vm1, %v4194_v34 }
  0xab   : > { %3512 = vmatprep.mubr.msk.f32.mxu0 %vm434_vm1, %v4198_v40 }
  0xae   : > { %3513 = vmatmul.mubr.msk.f32.gmra.mrb[4].mxu0 %vm434_vm1, %v4210_v43 }
  0xaf   : > { %3515 = vmatprep.mubr.msk.f32.mxu0 %vm434_vm1, %v4214_v45 }
  0xb2   : > { %3516 = vmatmul.mubr.msk.f32.gmra.mrb[6].mxu0 %vm434_vm1, %v4226_v48 }
  0xb3   : > { %3518 = vmatprep.mubr.msk.f32.mxu0 %vm434_vm1, %v4230_v50 }
  0xb6   : > { %3519 = vmatmul.mubr.msk.f32.gmra.mrb[8].mxu0 %vm434_vm1, %v4242_v52 }
  0xb7   : > { %3521 = vmatprep.mubr.msk.f32.mxu0 %vm434_vm1, %v4246_v54 }
  0xba   : > { %3522 = vmatmul.mubr.msk.f32.gmra.mrb[10].mxu0 %vm434_vm1, %v4258_v57 }
  0xbb   : > { %3524 = vmatprep.mubr.msk.f32.mxu0 %vm434_vm1, %v4262_v59 }
  0xbe   : > { %3525 = vmatmul.mubr.msk.f32.gmra.mrb[12].mxu0 %vm434_vm1, %v4274_v61 }
  0xbf   : > { %3527 = vmatprep.mubr.msk.f32.mxu0 %vm434_vm1, %v2363_v36 }
  0xc2   : > { %3528 = vmatmul.mubr.msk.f32.gmra.mrb[14].mxu0 %vm434_vm1, %v2364_v37 }
 0x158   : > { %v3378_v46 = vpop.f32.mrb[0].mxu1 }
 0x159   : > { %v1334_v56 = vpop.f32.mrb[1].mxu1 }
 0x15c   : > { %v3381_v2 = vpop.f32.mrb[2].mxu1 }
 0x15d   : > { %v1344_v3 = vpop.f32.mrb[3].mxu1 }
 0x160   : > { %v3384_v4 = vpop.f32.mrb[4].mxu1 }
 0x161   : > { %v1354_v5 = vpop.f32.mrb[5].mxu1 }
 0x164   : > { %v3387_v6 = vpop.f32.mrb[6].mxu1 }
 0x165   : > { %v4439_v10 = vpop.f32.mrb[7].mxu1 }
 0x168   : > { %v4441_v11 = vpop.f32.mrb[8].mxu1 }
 0x169   : > { %v4443_v12 = vpop.f32.mrb[9].mxu1 }
 0x16c   : > { %v4445_v13 = vpop.f32.mrb[10].mxu1 }
 0x16d   : > { %v4448_v14 = vpop.f32.mrb[11].mxu1 }
 0x170   : > { %v4450_v15 = vpop.f32.mrb[12].mxu1 }
 0x171   : > { %v4452_v16 = vpop.f32.mrb[13].mxu1 }
 0x174   : > { %v4454_v17 = vpop.f32.mrb[14].mxu1 }
 0x175   : > { %v4457_v18 = vpop.f32.mrb[15].mxu1 }
 0x179   : > { %v3508_v19 = vpop.f32.mrb[0].mxu0 }
 0x17a   : > { %v3589_v21 = vadd.f32 %v3508_v19, %v3378_v46  ;;  %v2484_v22 = vpop.f32.mrb[1].mxu0 }
 0x17b   : > { %v3590_v23 = vadd.f32 %v2484_v22, %v1334_v56 }
 0x17c   : > { %v2587_v24 = vadd.f32 %v3589_v21, %v4462_v20 }
 0x17d   : > { %v2586_v25 = vadd.f32 %v3590_v23, %v4462_v20  ;;  %v3511_v26 = vpop.f32.mrb[2].mxu0 }
 0x17e   : > { %vm2603_vm3 = vcmp.gt.f32.partialorder %v2587_v24, 0.0  ;;  %v2619_v27 = vmul.f32 0.01, %v2587_v24  ;;  %v3591_v28 = vadd.f32 %v3511_v26, %v3381_v2  ;;  %v2494_v29 = vpop.f32.mrb[3].mxu0 }
 0x17f   : > { %vm2602_vm5 = vcmp.gt.f32.partialorder %v2586_v25, 0.0  ;;  %v2618_v30 = vmul.f32 0.01, %v2586_v25  ;;  %v3592_v31 = vadd.f32 %v2494_v29, %v1344_v3 }
 0x180   : > { %v2635_v33 = vsel %vm2603_vm3, %v2587_v24, %v2619_v27  ;;  %v2589_v34 = vadd.f32 %v3591_v28, %v4462_v20 }
 0x181   : > { %2652 = vst.msk [vmem:[%s4469_s14 + $0x8] sm:$0xff] %vm2650_vm4, %v2635_v33  ;;  %v2634_v39 = vsel %vm2602_vm5, %v2586_v25, %v2618_v30  ;;  %v2588_v40 = vadd.f32 %v3592_v31, %v4462_v20  ;;  %v3514_v41 = vpop.f32.mrb[4].mxu0  ;;  %v2673_v25 = vlaneseq }
 0x182   : > { %2651 = vst.msk [vmem:[%s4469_s14] sm:$0xff] %vm2650_vm4, %v2634_v39  ;;  %vm2605_vm6 = vcmp.gt.f32.partialorder %v2589_v34, 0.0  ;;  %v2621_v43 = vmul.f32 0.01, %v2589_v34  ;;  %v3593_v44 = vadd.f32 %v3514_v41, %v3384_v4  ;;  %v2504_v45 = vpop.f32.mrb[5].mxu0  ;;  %v3566_v47 = vpack.c.bf16 %v2635_v33, %v2634_v39 }
 0x183   : > { %vm2604_vm7 = vcmp.gt.f32.partialorder %v2588_v40, 0.0  ;;  %v2620_v48 = vmul.f32 0.01, %v2588_v40  ;;  %v3594_v49 = vadd.f32 %v2504_v45, %v1354_v5  ;;  %v2677_v41 = vstv %s3111_s16 }
 0x184   : > { %v2637_v50 = vsel %vm2605_vm6, %v2589_v34, %v2621_v43  ;;  %v2591_v51 = vadd.f32 %v3593_v44, %v4462_v20  ;;  %3567 = vmatpush3.bf16.msra.mxu1 %v3566_v47  ;;  %vm2756_vm6 = vcmask 57344  }
 0x185   : > { %2654 = vst.msk [vmem:[%s4469_s14 + $0x18] sm:$0xff] %vm2650_vm4, %v2637_v50  ;;  %v2636_v52 = vsel %vm2604_vm7, %v2588_v40, %v2620_v48  ;;  %v2590_v53 = vadd.f32 %v3594_v49, %v4462_v20  ;;  %v3517_v54 = vpop.f32.mrb[6].mxu0  ;;  %3568 = vmatprep.subr.bf16.mxu1 %v3803_v38 }
 0x186   : > { %2653 = vst.msk [vmem:[%s4469_s14 + $0x10] sm:$0xff] %vm2650_vm4, %v2636_v52  ;;  %vm2607_vm8 = vcmp.gt.f32.partialorder %v2591_v51, 0.0  ;;  %v2623_v55 = vmul.f32 0.01, %v2591_v51  ;;  %v3595_v57 = vadd.f32 %v3517_v54, %v3387_v6  ;;  %v2514_v58 = vpop.f32.mrb[7].mxu0  ;;  %v3569_v59 = vpack.c.bf16 %v2637_v50, %v2636_v52 }
 0x187   : > { %vm2606_vm9 = vcmp.gt.f32.partialorder %v2590_v53, 0.0  ;;  %v2622_v60 = vmul.f32 0.01, %v2590_v53  ;;  %v3596_v61 = vadd.f32 %v2514_v58, %v4439_v10 }
 0x188   : > { %v2639_v62 = vsel %vm2607_vm8, %v2591_v51, %v2623_v55  ;;  %v2593_v63 = vadd.f32 %v3595_v57, %v4462_v20  ;;  %3570 = vmatpush3.bf16.msra.mxu1 %v3569_v59 }
 0x189   : > { %2656 = vst.msk [vmem:[%s4469_s14 + $0x28] sm:$0xff] %vm2650_vm4, %v2639_v62  ;;  %v2638_v0 = vsel %vm2606_vm9, %v2590_v53, %v2622_v60  ;;  %v2592_v1 = vadd.f32 %v3596_v61, %v4462_v20  ;;  %v3520_v7 = vpop.f32.mrb[8].mxu0  ;;  %3571 = vmatprep.subr.bf16.mxu1 %v3803_v38 }
 0x18a   : > { %2655 = vst.msk [vmem:[%s4469_s14 + $0x20] sm:$0xff] %vm2650_vm4, %v2638_v0  ;;  %vm2609_vm10 = vcmp.gt.f32.partialorder %v2593_v63, 0.0  ;;  %v2625_v8 = vmul.f32 0.01, %v2593_v63  ;;  %v3597_v9 = vadd.f32 %v3520_v7, %v4441_v11  ;;  %v2524_v32 = vpop.f32.mrb[9].mxu0  ;;  %v3572_v35 = vpack.c.bf16 %v2639_v62, %v2638_v0 }
 0x18b   : > { %vm2608_vm11 = vcmp.gt.f32.partialorder %v2592_v1, 0.0  ;;  %v2624_v36 = vmul.f32 0.01, %v2592_v1  ;;  %v3598_v37 = vadd.f32 %v2524_v32, %v4443_v12 }
 0x18c   : > { %v2641_v46 = vsel %vm2609_vm10, %v2593_v63, %v2625_v8  ;;  %v2595_v56 = vadd.f32 %v3597_v9, %v4462_v20  ;;  %3573 = vmatpush3.bf16.msra.mxu1 %v3572_v35 }
 0x18d   : > { %2658 = vst.msk [vmem:[%s4469_s14 + $0x38] sm:$0xff] %vm2650_vm4, %v2641_v46  ;;  %v2640_v2 = vsel %vm2608_vm11, %v2592_v1, %v2624_v36  ;;  %v2594_v3 = vadd.f32 %v3598_v37, %v4462_v20  ;;  %v3523_v4 = vpop.f32.mrb[10].mxu0  ;;  %3574 = vmatprep.subr.bf16.mxu1 %v3803_v38 }
 0x18e   : > { %2657 = vst.msk [vmem:[%s4469_s14 + $0x30] sm:$0xff] %vm2650_vm4, %v2640_v2  ;;  %vm2611_vm12 = vcmp.gt.f32.partialorder %v2595_v56, 0.0  ;;  %v2627_v5 = vmul.f32 0.01, %v2595_v56  ;;  %v3599_v6 = vadd.f32 %v3523_v4, %v4445_v13  ;;  %v2534_v10 = vpop.f32.mrb[11].mxu0  ;;  %v3575_v11 = vpack.c.bf16 %v2641_v46, %v2640_v2 }
 0x18f   : > { %vm2610_vm13 = vcmp.gt.f32.partialorder %v2594_v3, 0.0  ;;  %v2626_v12 = vmul.f32 0.01, %v2594_v3  ;;  %v3600_v19 = vadd.f32 %v2534_v10, %v4448_v14 }
 0x190   : > { %v2643_v21 = vsel %vm2611_vm12, %v2595_v56, %v2627_v5  ;;  %v2597_v22 = vadd.f32 %v3599_v6, %v4462_v20  ;;  %3576 = vmatpush3.bf16.msra.mxu1 %v3575_v11 }
 0x191   : > { %2660 = vst.msk [vmem:[%s4469_s14 + $0x48] sm:$0xff] %vm2650_vm4, %v2643_v21  ;;  %v2642_v23 = vsel %vm2610_vm13, %v2594_v3, %v2626_v12  ;;  %v2596_v13 = vadd.f32 %v3600_v19, %v4462_v20  ;;  %v3526_v24 = vpop.f32.mrb[12].mxu0  ;;  %3577 = vmatprep.subr.bf16.mxu1 %v3803_v38 }
 0x192   : > { %2659 = vst.msk [vmem:[%s4469_s14 + $0x40] sm:$0xff] %vm2650_vm4, %v2642_v23  ;;  %vm2613_vm14 = vcmp.gt.f32.partialorder %v2597_v22, 0.0  ;;  %v2629_v26 = vmul.f32 0.01, %v2597_v22  ;;  %v3601_v14 = vadd.f32 %v3526_v24, %v4450_v15  ;;  %v2544_v27 = vpop.f32.mrb[13].mxu0  ;;  %v3578_v28 = vpack.c.bf16 %v2643_v21, %v2642_v23 }
 0x193   : > { %vm2612_vm15 = vcmp.gt.f32.partialorder %v2596_v13, 0.0  ;;  %v2628_v29 = vmul.f32 0.01, %v2596_v13  ;;  %v3602_v30 = vadd.f32 %v2544_v27, %v4452_v16  ;;  %v2674_v15 = vand.u32 127, %v2673_v25 }
 0x194   : > { %v2645_v31 = vsel %vm2613_vm14, %v2597_v22, %v2629_v26  ;;  %v2599_v33 = vadd.f32 %v3601_v14, %v4462_v20  ;;  %3579 = vmatpush3.bf16.msra.mxu1 %v3578_v28 }
 0x195   : > { %2662 = vst.msk [vmem:[%s4469_s14 + $0x58] sm:$0xff] %vm2650_vm4, %v2645_v31  ;;  %v2644_v34 = vsel %vm2612_vm15, %v2596_v13, %v2628_v29  ;;  %v2598_v39 = vadd.f32 %v3602_v30, %v4462_v20  ;;  %v3529_v40 = vpop.f32.mrb[14].mxu0  ;;  %3580 = vmatprep.subr.bf16.mxu1 %v3803_v38  ;;  %vm2678_vm2 = vcmp.lt.s32.totalorder %v2674_v15, %v2677_v41 }
 0x196   : > { %2661 = vst.msk [vmem:[%s4469_s14 + $0x50] sm:$0xff] %vm2650_vm4, %v2644_v34  ;;  %vm2615_vm0 = vcmp.gt.f32.partialorder %v2599_v33, 0.0  ;;  %v2631_v16 = vmul.f32 0.01, %v2599_v33  ;;  %v3603_v43 = vadd.f32 %v3529_v40, %v4454_v17  ;;  %v2554_v44 = vpop.f32.mrb[15].mxu0  ;;  %v3581_v45 = vpack.c.bf16 %v2645_v31, %v2644_v34 }
 0x197   : > { %vm2614_vm1 = vcmp.gt.f32.partialorder %v2598_v39, 0.0  ;;  %v2630_v47 = vmul.f32 0.01, %v2598_v39  ;;  %v3604_v48 = vadd.f32 %v2554_v44, %v4457_v18  ;;  %v3112_v55 = vsel %vm2678_vm2, 1.0, %v3805_v42 }
 0x198   : > { %v2647_v49 = vsel %vm2615_vm0, %v2599_v33, %v2631_v16  ;;  %v2601_v50 = vadd.f32 %v3603_v43, %v4462_v20  ;;  %3582 = vmatpush3.bf16.msra.mxu1 %v3581_v45 }
 0x199   : > { %2664 = vst.msk [vmem:[%s4469_s14 + $0x68] sm:$0xff] %vm2650_vm4, %v2647_v49  ;;  %v2646_v51 = vsel %vm2614_vm1, %v2598_v39, %v2630_v47  ;;  %v2600_v52 = vadd.f32 %v3604_v48, %v4462_v20  ;;  %3583 = vmatprep.subr.bf16.mxu1 %v3803_v38  ;;  %v2675_v20 = vld [vmem:[%s4575_s4] sm:$0x1] }
 0x19a   : > { %2663 = vst.msk [vmem:[%s4469_s14 + $0x60] sm:$0xff] %vm2650_vm4, %v2646_v51  ;;  %vm2617_vm3 = vcmp.gt.f32.partialorder %v2601_v50, 0.0  ;;  %v2633_v17 = vmul.f32 0.01, %v2601_v50  ;;  %v3584_v18 = vpack.c.bf16 %v2647_v49, %v2646_v51  ;;  %v2681_v59 = vmul.f32 %v3112_v55, %v2675_v20 }
 0x19b   : > { %vm2616_vm5 = vcmp.gt.f32.partialorder %v2600_v52, 0.0  ;;  %v2632_v53 = vmul.f32 0.01, %v2600_v52 }
 0x19c   : > { %v2649_v54 = vsel %vm2617_vm3, %v2601_v50, %v2633_v17  ;;  %3585 = vmatpush3.bf16.msra.mxu1 %v3584_v18 }
 0x19d   : > { %2666 = vst.msk [vmem:[%s4469_s14 + $0x78] sm:$0xff] %vm2650_vm4, %v2649_v54  ;;  %v2648_v57 = vsel %vm2616_vm5, %v2600_v52, %v2632_v53  ;;  %3586 = vmatprep.subr.bf16.mxu1 %v3803_v38 }
 0x19e   : > { %2665 = vst.msk [vmem:[%s4469_s14 + $0x70] sm:$0xff] %vm2650_vm4, %v2648_v57  ;;  %v3587_v58 = vpack.c.bf16 %v2649_v54, %v2648_v57 }
 0x1a0   : > { %3588 = vmatpush3.bf16.msra.mxu1 %v3587_v58 }
 0x1a3   : > { %3563 = vmatmul.mubr.f32.vlgmr.msra.gmra.mrb[16].mxu1 %v2681_v59 }
 0x276   : > { %v2748_v42 = vpop.f32.mrb[16].mxu1 }
 0x277   : > { %2757 = vst.msk [vmem:[%s416_s30] sm:$0x1] %vm2756_vm6, %v2748_v42  ;;  %v3564_v60 = vpop.f32.mrb[17].mxu1 }
 0x278 PF: > { %s17_s25 = sadd.s32 1, %s3801_s25   ;;  %s4578_s21 = smov %s3793_s23 }
 0x279   : > { %p14_p12 = scmp.ge.s32.totalorder %s17_s25, 6   ;;  %s4579_s22 = smov %s3797_s24 }
 0x27a   : > { %s4580_s23 = smov %s4583_s26  ;;  %s4581_s24 = smov %s4587_s27 }
 0x27b   :  { %16 = sbr.rel (!%p14_p12) target bundleno = 3 (0x3), region = 103 }

</bundles_post_ra>
